<compile_context>
chip_gen: v5e
topology: v5e:2x2
jax: 0.10.0
libtpu: 0.0.40
codegen_flags: <defaults>
</compile_context>

<pallas_src>
import functools

import jax
import jax.numpy as jnp
from jax.experimental import pallas as pl
from jax.experimental.pallas import tpu as pltpu

Z_PAD = 128  # lane-aligned width used for mu / log_var inside the kernel


def _round_up(n, m):
    return ((n + m - 1) // m) * m


# ----------------------------------------------------------------------------
# Kernel: one batch tile per grid step; weights resident across the grid.
# ----------------------------------------------------------------------------
def vae_kernel(x_ref, eps_ref,
               w1_ref, b1_ref, w2_ref, b2_ref,
               w3_ref, b3_ref, w4_ref, b4_ref,
               out_ref, enc_ref):
    f32 = jnp.float32
    mm_dtype = w1_ref.dtype  # bf16 (or f32) matmul operands, f32 accumulation

    x = x_ref[...]
    eps = eps_ref[...]

    # ----- encoder: Linear(784,256) -> ReLU -> Linear(256, 2*Z_PAD) -----
    h = jnp.dot(x.astype(mm_dtype), w1_ref[...],
                preferred_element_type=f32) + b1_ref[...]
    h = jnp.maximum(h, 0.0)
    enc = jnp.dot(h.astype(mm_dtype), w2_ref[...],
                  preferred_element_type=f32) + b2_ref[...]

    # ----- vreg-aligned chunk: mu = lanes [0,128), log_var = lanes [128,256) -
    mu = enc[:, :Z_PAD]
    log_var = enc[:, Z_PAD:]

    # ----- reparameterization: z = mu + eps * exp(log_var / 2) -----
    z = mu + eps * jnp.exp(log_var * 0.5)

    # ----- decoder: Linear(128->256) -> ReLU -> Linear(256,784) -> Sigmoid ---
    h2 = jnp.dot(z.astype(mm_dtype), w3_ref[...],
                 preferred_element_type=f32) + b3_ref[...]
    h2 = jnp.maximum(h2, 0.0)
    dec = jnp.dot(h2.astype(mm_dtype), w4_ref[...],
                  preferred_element_type=f32) + b4_ref[...]

    out_ref[...] = jax.nn.sigmoid(dec)
    enc_ref[...] = enc  # single lane-dense (tile_b, 256) store of mu|log_var


# ----------------------------------------------------------------------------
# Parameter preparation: pad the z split to 128 lanes, cast matmul operands.
# ----------------------------------------------------------------------------
def prepare_params(params, *, z_dim, matmul_dtype=jnp.bfloat16):
    w1, b1, w2, b2, w3, b3, w4, b4 = params

    # w2/b2: (256, 2*z_dim) -> (256, 2*Z_PAD); mu cols -> [0,z_dim),
    # log_var cols -> [Z_PAD, Z_PAD+z_dim); padded columns are ZERO.
    w2p = jnp.zeros((w2.shape[0], 2 * Z_PAD), w2.dtype)
    w2p = w2p.at[:, :z_dim].set(w2[:, :z_dim])
    w2p = w2p.at[:, Z_PAD:Z_PAD + z_dim].set(w2[:, z_dim:])
    b2p = jnp.zeros((1, 2 * Z_PAD), b2.dtype)
    b2p = b2p.at[:, :z_dim].set(b2[:, :z_dim])
    b2p = b2p.at[:, Z_PAD:Z_PAD + z_dim].set(b2[:, z_dim:])

    # w3: (z_dim, 256) -> (Z_PAD, 256) with zero rows for padded z lanes.
    w3p = jnp.zeros((Z_PAD, w3.shape[1]), w3.dtype).at[:z_dim, :].set(w3)

    cast = lambda w: w.astype(matmul_dtype)
    return (cast(w1), b1, cast(w2p), b2p, cast(w3p), b3, cast(w4), b4)


# ----------------------------------------------------------------------------
# Wrapper: batch-tiled, weight-resident pallas_call.
# ----------------------------------------------------------------------------
@functools.partial(jax.jit, static_argnames=("z_dim", "tile_b"))
def vae_forward(x, eps, prepared_params, *, z_dim, tile_b=256):
    """x: (B, 784) f32, eps: (B, z_dim) f32.  Returns (out, mu, log_var)."""
    B = x.shape[0]
    w1, b1, w2, b2, w3, b3, w4, b4 = prepared_params
    d_in = w1.shape[0]    # 784
    d_out = w4.shape[1]   # 784

    # Pick a batch tile: up to `tile_b` rows, at least a sublane multiple of 8.
    tb = min(tile_b, _round_up(B, 8))
    b_pad = _round_up(B, tb)

    if b_pad != B:
        x = jnp.pad(x, ((0, b_pad - B), (0, 0)))
    # eps padded to Z_PAD lanes (zero in padded lanes / padded rows).
    eps_p = jnp.zeros((b_pad, Z_PAD), jnp.float32).at[:B, :z_dim].set(eps)

    grid = (b_pad // tb,)

    # Weights/biases: constant block index -> stay resident in VMEM.
    resident = lambda a: pl.BlockSpec(a.shape, lambda i: (0,) * a.ndim)

    out, enc = pl.pallas_call(
        vae_kernel,
        out_shape=(
            jax.ShapeDtypeStruct((b_pad, d_out), jnp.float32),
            jax.ShapeDtypeStruct((b_pad, 2 * Z_PAD), jnp.float32),
        ),
        grid=grid,
        in_specs=[
            pl.BlockSpec((tb, d_in), lambda i: (i, 0)),     # x: batch tiled
            pl.BlockSpec((tb, Z_PAD), lambda i: (i, 0)),    # eps: batch tiled
            resident(w1), resident(b1), resident(w2), resident(b2),
            resident(w3), resident(b3), resident(w4), resident(b4),
        ],
        out_specs=(
            pl.BlockSpec((tb, d_out), lambda i: (i, 0)),
            pl.BlockSpec((tb, 2 * Z_PAD), lambda i: (i, 0)),
        ),
        compiler_params=pltpu.CompilerParams(
            dimension_semantics=("parallel",),
        ),
    )(x, eps_p, w1, b1, w2, b2, w3, b3, w4, b4)

    out = out[:B]
    mu = enc[:B, :z_dim]
    log_var = enc[:B, Z_PAD:Z_PAD + z_dim]
    return out, mu, log_var


# ----------------------------------------------------------------------------
# Reference & init
# ----------------------------------------------------------------------------
def vae_forward_ref(x, eps, params, *, z_dim, matmul_dtype=jnp.bfloat16):
    """Pure-JAX reference (same matmul precision as the kernel)."""
    w1, b1, w2, b2, w3, b3, w4, b4 = params
    mm = lambda a, w: jnp.dot(a.astype(matmul_dtype), w.astype(matmul_dtype),
                              preferred_element_type=jnp.float32)
    h = jnp.maximum(mm(x, w1) + b1, 0.0)
    enc = mm(h, w2) + b2
    mu, log_var = enc[:, :z_dim], enc[:, z_dim:]
    z = mu + eps * jnp.exp(log_var * 0.5)
    h2 = jnp.maximum(mm(z, w3) + b3, 0.0)
    out = jax.nn.sigmoid(mm(h2, w4) + b4)
    return out, mu, log_var


def init_params(key, z_dim):
    """Deterministic synthetic weights (PyTorch-Linear-like uniform init)."""
    def linear(key, fan_in, fan_out):
        k_w, k_b = jax.random.split(key)
        bound = 1.0 / jnp.sqrt(fan_in)
        w = jax.random.uniform(k_w, (fan_in, fan_out), jnp.float32, -bound, bound)
        b = jax.random.uniform(k_b, (1, fan_out), jnp.float32, -bound, bound)
        return w, b

    k1, k2, k3, k4 = jax.random.split(key, 4)
    w1, b1 = linear(k1, 784, 256)          # encoder Linear(784, 256)
    w2, b2 = linear(k2, 256, 2 * z_dim)    # encoder Linear(256, 2*z_dim)
    w3, b3 = linear(k3, z_dim, 256)        # decoder Linear(z_dim, 256)
    w4, b4 = linear(k4, 256, 784)          # decoder Linear(256, 784)
    return (w1, b1, w2, b2, w3, b3, w4, b4)


def _check(got, ref, atol=2e-2, rtol=2e-2):
    assert got.shape == ref.shape, (got.shape, ref.shape)
    assert jnp.allclose(got, ref, atol=atol, rtol=rtol), (
        float(jnp.max(jnp.abs(got - ref))))


if __name__ == "__main__":
    # TODO(synk): torch.randn is sampled inside forward() in PyTorch; here the
    # Gaussian noise `eps` is supplied as an explicit input for determinism.
    z_dim = 100

    key = jax.random.PRNGKey(0)
    k_params, k_x, k_eps, k_x2, k_eps2 = jax.random.split(key, 5)

    params = init_params(k_params, z_dim)
    prepared = prepare_params(params, z_dim=z_dim, matmul_dtype=jnp.bfloat16)

    # --- small batch (spec-sized) ---
    B = 2
    x = jax.random.uniform(k_x, (B, 784), jnp.float32)
    eps = jax.random.normal(k_eps, (B, z_dim), jnp.float32)

    out, mu, log_var = vae_forward(x, eps, prepared, z_dim=z_dim)
    jax.block_until_ready((out, mu, log_var))

    out_r, mu_r, lv_r = vae_forward_ref(x, eps, params, z_dim=z_dim)
    _check(out, out_r)
    _check(mu, mu_r)
    _check(log_var, lv_r)

    # --- larger batch: exercises the batch grid (>1 step) and padding path ---
    B2 = 300
    x2 = jax.random.uniform(k_x2, (B2, 784), jnp.float32)
    eps2 = jax.random.normal(k_eps2, (B2, z_dim), jnp.float32)

    out2, mu2, lv2 = vae_forward(x2, eps2, prepared, z_dim=z_dim)
    jax.block_until_ready((out2, mu2, lv2))

    out2_r, mu2_r, lv2_r = vae_forward_ref(x2, eps2, params, z_dim=z_dim)
    _check(out2, out2_r)
    _check(mu2, mu2_r)
    _check(lv2, lv2_r)

    print("KERNEL_OK")
</pallas_src>

<mosaic_0001>
module attributes {stable_mosaic.version = 11 : i64} {
  func.func @vae_kernel(%arg0: i32, %arg1: memref<8x784xf32, #tpu.memory_space<vmem>>, %arg2: memref<8x128xf32, #tpu.memory_space<vmem>>, %arg3: memref<784x256xbf16, #tpu.memory_space<vmem>>, %arg4: memref<1x256xf32, #tpu.memory_space<vmem>>, %arg5: memref<256x256xbf16, #tpu.memory_space<vmem>>, %arg6: memref<1x256xf32, #tpu.memory_space<vmem>>, %arg7: memref<128x256xbf16, #tpu.memory_space<vmem>>, %arg8: memref<1x256xf32, #tpu.memory_space<vmem>>, %arg9: memref<256x784xbf16, #tpu.memory_space<vmem>>, %arg10: memref<1x784xf32, #tpu.memory_space<vmem>>, %arg11: memref<8x784xf32, #tpu.memory_space<vmem>>, %arg12: memref<8x256xf32, #tpu.memory_space<vmem>>) attributes {dimension_semantics = [#tpu.dimension_semantics<parallel>], iteration_bounds = array<i64: 1>, scalar_prefetch = 0 : i64, scratch_operands = 0 : i64, tpu.core_type = #tpu.core_type<tc>, window_params = [{transform_indices = @transform_0, window_bounds = array<i64: 8, 784>}, {transform_indices = @transform_1, window_bounds = array<i64: 8, 128>}, {pipeline_mode = #tpu.pipeline_mode<synchronous>, transform_indices = @transform_2, window_bounds = array<i64: 784, 256>}, {pipeline_mode = #tpu.pipeline_mode<synchronous>, transform_indices = @transform_3, window_bounds = array<i64: 1, 256>}, {pipeline_mode = #tpu.pipeline_mode<synchronous>, transform_indices = @transform_4, window_bounds = array<i64: 256, 256>}, {pipeline_mode = #tpu.pipeline_mode<synchronous>, transform_indices = @transform_5, window_bounds = array<i64: 1, 256>}, {pipeline_mode = #tpu.pipeline_mode<synchronous>, transform_indices = @transform_6, window_bounds = array<i64: 128, 256>}, {pipeline_mode = #tpu.pipeline_mode<synchronous>, transform_indices = @transform_7, window_bounds = array<i64: 1, 256>}, {pipeline_mode = #tpu.pipeline_mode<synchronous>, transform_indices = @transform_8, window_bounds = array<i64: 256, 784>}, {pipeline_mode = #tpu.pipeline_mode<synchronous>, transform_indices = @transform_9, window_bounds = array<i64: 1, 784>}, {transform_indices = @transform_10, window_bounds = array<i64: 8, 784>}, {transform_indices = @transform_11, window_bounds = array<i64: 8, 256>}]} {
    %c0 = arith.constant 0 : index
    %c0_0 = arith.constant 0 : index
    %0 = vector.load %arg1[%c0, %c0_0] : memref<8x784xf32, #tpu.memory_space<vmem>>, vector<8x784xf32>
    %c0_1 = arith.constant 0 : index
    %c0_2 = arith.constant 0 : index
    %1 = vector.load %arg2[%c0_1, %c0_2] : memref<8x128xf32, #tpu.memory_space<vmem>>, vector<8x128xf32>
    %2 = arith.truncf %0 : vector<8x784xf32> to vector<8x784xbf16>
    %c0_3 = arith.constant 0 : index
    %c0_4 = arith.constant 0 : index
    %3 = vector.load %arg3[%c0_3, %c0_4] : memref<784x256xbf16, #tpu.memory_space<vmem>>, vector<784x256xbf16>
    %cst = arith.constant dense<0.000000e+00> : vector<8x256xf32>
    %4 = tpu.matmul %2, %3, %cst {dimension_numbers = #tpu.dot_dimension_numbers<[1], [0], [0], [1], [0, 0, 1, 1], [], []>} : vector<8x784xbf16>, vector<784x256xbf16>, vector<8x256xf32> -> vector<8x256xf32>
    %c0_5 = arith.constant 0 : index
    %c0_6 = arith.constant 0 : index
    %5 = vector.load %arg4[%c0_5, %c0_6] : memref<1x256xf32, #tpu.memory_space<vmem>>, vector<1x256xf32>
    %6 = vector.broadcast %5 : vector<1x256xf32> to vector<8x256xf32>
    %7 = arith.addf %4, %6 : vector<8x256xf32>
    %cst_7 = arith.constant 0.000000e+00 : f32
    %8 = vector.broadcast %cst_7 : f32 to vector<8x256xf32>
    %9 = arith.maximumf %7, %8 : vector<8x256xf32>
    %10 = arith.truncf %9 : vector<8x256xf32> to vector<8x256xbf16>
    %c0_8 = arith.constant 0 : index
    %c0_9 = arith.constant 0 : index
    %11 = vector.load %arg5[%c0_8, %c0_9] : memref<256x256xbf16, #tpu.memory_space<vmem>>, vector<256x256xbf16>
    %cst_10 = arith.constant dense<0.000000e+00> : vector<8x256xf32>
    %12 = tpu.matmul %10, %11, %cst_10 {dimension_numbers = #tpu.dot_dimension_numbers<[1], [0], [0], [1], [0, 0, 1, 1], [], []>} : vector<8x256xbf16>, vector<256x256xbf16>, vector<8x256xf32> -> vector<8x256xf32>
    %c0_11 = arith.constant 0 : index
    %c0_12 = arith.constant 0 : index
    %13 = vector.load %arg6[%c0_11, %c0_12] : memref<1x256xf32, #tpu.memory_space<vmem>>, vector<1x256xf32>
    %14 = vector.broadcast %13 : vector<1x256xf32> to vector<8x256xf32>
    %15 = arith.addf %12, %14 : vector<8x256xf32>
    %16 = vector.extract_strided_slice %15 {offsets = [0, 0], sizes = [8, 128], strides = [1, 1]} : vector<8x256xf32> to vector<8x128xf32>
    %17 = vector.extract_strided_slice %15 {offsets = [0, 128], sizes = [8, 128], strides = [1, 1]} : vector<8x256xf32> to vector<8x128xf32>
    %cst_13 = arith.constant 5.000000e-01 : f32
    %18 = vector.broadcast %cst_13 : f32 to vector<8x128xf32>
    %19 = arith.mulf %17, %18 : vector<8x128xf32>
    %20 = math.exp %19 : vector<8x128xf32>
    %21 = arith.mulf %1, %20 : vector<8x128xf32>
    %22 = arith.addf %16, %21 : vector<8x128xf32>
    %23 = arith.truncf %22 : vector<8x128xf32> to vector<8x128xbf16>
    %c0_14 = arith.constant 0 : index
    %c0_15 = arith.constant 0 : index
    %24 = vector.load %arg7[%c0_14, %c0_15] : memref<128x256xbf16, #tpu.memory_space<vmem>>, vector<128x256xbf16>
    %cst_16 = arith.constant dense<0.000000e+00> : vector<8x256xf32>
    %25 = tpu.matmul %23, %24, %cst_16 {dimension_numbers = #tpu.dot_dimension_numbers<[1], [0], [0], [1], [0, 0, 1, 1], [], []>} : vector<8x128xbf16>, vector<128x256xbf16>, vector<8x256xf32> -> vector<8x256xf32>
    %c0_17 = arith.constant 0 : index
    %c0_18 = arith.constant 0 : index
    %26 = vector.load %arg8[%c0_17, %c0_18] : memref<1x256xf32, #tpu.memory_space<vmem>>, vector<1x256xf32>
    %27 = vector.broadcast %26 : vector<1x256xf32> to vector<8x256xf32>
    %28 = arith.addf %25, %27 : vector<8x256xf32>
    %cst_19 = arith.constant 0.000000e+00 : f32
    %29 = vector.broadcast %cst_19 : f32 to vector<8x256xf32>
    %30 = arith.maximumf %28, %29 : vector<8x256xf32>
    %31 = arith.truncf %30 : vector<8x256xf32> to vector<8x256xbf16>
    %c0_20 = arith.constant 0 : index
    %c0_21 = arith.constant 0 : index
    %32 = vector.load %arg9[%c0_20, %c0_21] : memref<256x784xbf16, #tpu.memory_space<vmem>>, vector<256x784xbf16>
    %cst_22 = arith.constant dense<0.000000e+00> : vector<8x784xf32>
    %33 = tpu.matmul %31, %32, %cst_22 {dimension_numbers = #tpu.dot_dimension_numbers<[1], [0], [0], [1], [0, 0, 1, 1], [], []>} : vector<8x256xbf16>, vector<256x784xbf16>, vector<8x784xf32> -> vector<8x784xf32>
    %c0_23 = arith.constant 0 : index
    %c0_24 = arith.constant 0 : index
    %34 = vector.load %arg10[%c0_23, %c0_24] : memref<1x784xf32, #tpu.memory_space<vmem>>, vector<1x784xf32>
    %35 = vector.broadcast %34 : vector<1x784xf32> to vector<8x784xf32>
    %36 = arith.addf %33, %35 : vector<8x784xf32>
    %37 = arith.negf %36 : vector<8x784xf32>
    %38 = math.exp %37 : vector<8x784xf32>
    %cst_25 = arith.constant 1.000000e+00 : f32
    %39 = vector.broadcast %cst_25 : f32 to vector<8x784xf32>
    %40 = arith.addf %39, %38 : vector<8x784xf32>
    %41 = arith.divf %39, %40 : vector<8x784xf32>
    %c0_26 = arith.constant 0 : index
    %c0_27 = arith.constant 0 : index
    %42 = vector.load %arg11[%c0_26, %c0_27] : memref<8x784xf32, #tpu.memory_space<vmem>>, vector<8x784xf32>
    tpu.vector_store %arg11[%c0_26, %c0_27], %41 {strides = array<i32>} : memref<8x784xf32, #tpu.memory_space<vmem>>, vector<8x784xf32>,
    %c0_28 = arith.constant 0 : index
    %c0_29 = arith.constant 0 : index
    %43 = vector.load %arg12[%c0_28, %c0_29] : memref<8x256xf32, #tpu.memory_space<vmem>>, vector<8x256xf32>
    tpu.vector_store %arg12[%c0_28, %c0_29], %15 {strides = array<i32>} : memref<8x256xf32, #tpu.memory_space<vmem>>, vector<8x256xf32>,
    return
  }
  func.func @transform_0(%arg0: i32) -> (i32, i32) {
    %c0_i32 = arith.constant 0 : i32
    %c0_i32_0 = arith.constant 0 : i32
    return %arg0, %c0_i32 : i32, i32
  }
  func.func @transform_1(%arg0: i32) -> (i32, i32) {
    %c0_i32 = arith.constant 0 : i32
    %c0_i32_0 = arith.constant 0 : i32
    return %arg0, %c0_i32 : i32, i32
  }
  func.func @transform_2(%arg0: i32) -> (i32, i32) {
    %c0_i32 = arith.constant 0 : i32
    %c0_i32_0 = arith.constant 0 : i32
    %c0_i32_1 = arith.constant 0 : i32
    return %c0_i32, %c0_i32_0 : i32, i32
  }
  func.func @transform_3(%arg0: i32) -> (i32, i32) {
    %c0_i32 = arith.constant 0 : i32
    %c0_i32_0 = arith.constant 0 : i32
    %c0_i32_1 = arith.constant 0 : i32
    return %c0_i32, %c0_i32_0 : i32, i32
  }
  func.func @transform_4(%arg0: i32) -> (i32, i32) {
    %c0_i32 = arith.constant 0 : i32
    %c0_i32_0 = arith.constant 0 : i32
    %c0_i32_1 = arith.constant 0 : i32
    return %c0_i32, %c0_i32_0 : i32, i32
  }
  func.func @transform_5(%arg0: i32) -> (i32, i32) {
    %c0_i32 = arith.constant 0 : i32
    %c0_i32_0 = arith.constant 0 : i32
    %c0_i32_1 = arith.constant 0 : i32
    return %c0_i32, %c0_i32_0 : i32, i32
  }
  func.func @transform_6(%arg0: i32) -> (i32, i32) {
    %c0_i32 = arith.constant 0 : i32
    %c0_i32_0 = arith.constant 0 : i32
    %c0_i32_1 = arith.constant 0 : i32
    return %c0_i32, %c0_i32_0 : i32, i32
  }
  func.func @transform_7(%arg0: i32) -> (i32, i32) {
    %c0_i32 = arith.constant 0 : i32
    %c0_i32_0 = arith.constant 0 : i32
    %c0_i32_1 = arith.constant 0 : i32
    return %c0_i32, %c0_i32_0 : i32, i32
  }
  func.func @transform_8(%arg0: i32) -> (i32, i32) {
    %c0_i32 = arith.constant 0 : i32
    %c0_i32_0 = arith.constant 0 : i32
    %c0_i32_1 = arith.constant 0 : i32
    return %c0_i32, %c0_i32_0 : i32, i32
  }
  func.func @transform_9(%arg0: i32) -> (i32, i32) {
    %c0_i32 = arith.constant 0 : i32
    %c0_i32_0 = arith.constant 0 : i32
    %c0_i32_1 = arith.constant 0 : i32
    return %c0_i32, %c0_i32_0 : i32, i32
  }
  func.func @transform_10(%arg0: i32) -> (i32, i32) {
    %c0_i32 = arith.constant 0 : i32
    %c0_i32_0 = arith.constant 0 : i32
    return %arg0, %c0_i32 : i32, i32
  }
  func.func @transform_11(%arg0: i32) -> (i32, i32) {
    %c0_i32 = arith.constant 0 : i32
    %c0_i32_0 = arith.constant 0 : i32
    return %arg0, %c0_i32 : i32, i32
  }
}

</mosaic_0001>

<bundles_post_ra>
// kernel: vae_forward.1
= control target key start
LH: loop header
LB: loop body
LE: loop exit
PB: predicated region body
PF: predicated region fallthrough
CT: control target
= control target key end

     0   :  { %vm647_vm0 = vcmask 130048   ;;  %s5350_s2 = inlined_call_operand.vmem [shape: bf16[784,256], index: 2, kind: input, shape index: {}]   ;;  %s5351_s0 = inlined_call_operand.vmem [shape: f32[8,784], index: 0, kind: input, shape index: {}]   ;;  %s5352_s4 = inlined_call_operand.vmem [shape: bf16[256,256], index: 4, kind: input, shape index: {}]   ;;  %s5353_s3 = inlined_call_operand.vmem [shape: f32[1,256], index: 3, kind: input, shape index: {}]   ;;  %s5354_s6 = inlined_call_operand.vmem [shape: bf16[128,256], index: 6, kind: input, shape index: {}]   ;;  %s5355_s8 = inlined_call_operand.vmem [shape: bf16[256,784], index: 8, kind: input, shape index: {}]   ;;  %s5356_s5 = inlined_call_operand.vmem [shape: f32[1,256], index: 5, kind: input, shape index: {}]   ;;  %s5357_s11 = inlined_call_operand.vmem [shape: f32[8,256], index: 11, kind: output, shape index: {1}]   ;;  %s5358_s1 = inlined_call_operand.vmem [shape: f32[8,128], index: 1, kind: input, shape index: {}]   ;;  %s5359_s7 = inlined_call_operand.vmem [shape: f32[1,256], index: 7, kind: input, shape index: {}]   ;;  %s5360_s9 = inlined_call_operand.vmem [shape: f32[1,784], index: 9, kind: input, shape index: {}]   ;;  %s5361_s10 = inlined_call_operand.vmem [shape: f32[8,784], index: 10, kind: output, shape index: {0}]  }
   0x1   :  { %v2335_v0 = vld [vmem:[%s5350_s2 + $0x70] sm:$0xf]  ;;  %v3333_v1 = vld [vmem:[%s5350_s2 + $0x74] sm:$0xf0]  ;;  %v2327_v11 = vld [vmem:[%s5350_s2 + $0x60] sm:$0xf] }
   0x2   :  { %v2463_v2 = vld [vmem:[%s5350_s2 + $0x170] sm:$0xf]  ;;  %v2336_v3 = vor.u32 %v3333_v1, %v2335_v0  ;;  %v3365_v4 = vld [vmem:[%s5350_s2 + $0x174] sm:$0xf0]  ;;  %v3331_v13 = vld [vmem:[%s5350_s2 + $0x64] sm:$0xf0] }
   0x3   :  { %v2527_v5 = vld [vmem:[%s5350_s2 + $0x1f0] sm:$0xf]  ;;  %v3381_v6 = vld [vmem:[%s5350_s2 + $0x1f4] sm:$0xf0]  ;;  %v2464_v7 = vor.u32 %v3365_v4, %v2463_v2  ;;  %v2455_v14 = vld [vmem:[%s5350_s2 + $0x160] sm:$0xf]  ;;  %v2328_v16 = vor.u32 %v3331_v13, %v2327_v11 }
   0x4   :  { %v2528_v8 = vor.u32 %v3381_v6, %v2527_v5  ;;  %v2399_v9 = vld [vmem:[%s5350_s2 + $0xf0] sm:$0xf]  ;;  %v3349_v10 = vld [vmem:[%s5350_s2 + $0xf4] sm:$0xf0]  ;;  %651 = vmatpush.bf16.msra.mxu0 %v2336_v3  ;;  %v3363_v15 = vld [vmem:[%s5350_s2 + $0x164] sm:$0xf0] }
   0x5   :  { %v2400_v12 = vor.u32 %v3349_v10, %v2399_v9  ;;  %677 = vmatpush.bf16.msra.mxu2 %v2464_v7  ;;  %v2456_v17 = vor.u32 %v3363_v15, %v2455_v14  ;;  %v2519_v18 = vld [vmem:[%s5350_s2 + $0x1e0] sm:$0xf]  ;;  %v3379_v19 = vld [vmem:[%s5350_s2 + $0x1e4] sm:$0xf0]  ;;  %v2319_v23 = vld [vmem:[%s5350_s2 + $0x50] sm:$0xf] }
   0x6   :  { %690 = vmatpush.bf16.msra.mxu3 %v2528_v8  ;;  %v2391_v20 = vld [vmem:[%s5350_s2 + $0xe0] sm:$0xf]  ;;  %v2520_v21 = vor.u32 %v3379_v19, %v2519_v18  ;;  %v3347_v22 = vld [vmem:[%s5350_s2 + $0xe4] sm:$0xf0]  ;;  %v3329_v24 = vld [vmem:[%s5350_s2 + $0x54] sm:$0xf0] }
   0x7   :  { %664 = vmatpush.bf16.msra.mxu1 %v2400_v12  ;;  %v2392_v25 = vor.u32 %v3347_v22, %v2391_v20  ;;  %v2447_v26 = vld [vmem:[%s5350_s2 + $0x150] sm:$0xf]  ;;  %v3361_v27 = vld [vmem:[%s5350_s2 + $0x154] sm:$0xf0]  ;;  %v2320_v29 = vor.u32 %v3329_v24, %v2319_v23  ;;  %v2311_v35 = vld [vmem:[%s5350_s2 + $0x40] sm:$0xf] }
   0x8   :  { %v2511_v28 = vld [vmem:[%s5350_s2 + $0x1d0] sm:$0xf]  ;;  %652 = vmatpush.bf16.msra.mxu0 %v2328_v16  ;;  %v3377_v30 = vld [vmem:[%s5350_s2 + $0x1d4] sm:$0xf0]  ;;  %v2448_v33 = vor.u32 %v3361_v27, %v2447_v26  ;;  %v3327_v36 = vld [vmem:[%s5350_s2 + $0x44] sm:$0xf0] }
   0x9   :  { %v2383_v31 = vld [vmem:[%s5350_s2 + $0xd0] sm:$0xf]  ;;  %v3345_v32 = vld [vmem:[%s5350_s2 + $0xd4] sm:$0xf0]  ;;  %678 = vmatpush.bf16.msra.mxu2 %v2456_v17  ;;  %v2512_v34 = vor.u32 %v3377_v30, %v2511_v28  ;;  %v2439_v37 = vld [vmem:[%s5350_s2 + $0x140] sm:$0xf]  ;;  %v2312_v44 = vor.u32 %v3327_v36, %v2311_v35 }
   0xa   :  { %691 = vmatpush.bf16.msra.mxu3 %v2520_v21  ;;  %v2384_v38 = vor.u32 %v3345_v32, %v2383_v31  ;;  %v3359_v39 = vld [vmem:[%s5350_s2 + $0x144] sm:$0xf0]  ;;  %v2503_v40 = vld [vmem:[%s5350_s2 + $0x1c0] sm:$0xf]  ;;  %v2303_v47 = vld [vmem:[%s5350_s2 + $0x30] sm:$0xf] }
   0xb   :  { %665 = vmatpush.bf16.msra.mxu1 %v2392_v25  ;;  %v3375_v41 = vld [vmem:[%s5350_s2 + $0x1c4] sm:$0xf0]  ;;  %v2375_v42 = vld [vmem:[%s5350_s2 + $0xc0] sm:$0xf]  ;;  %v2440_v45 = vor.u32 %v3359_v39, %v2439_v37  ;;  %v3325_v48 = vld [vmem:[%s5350_s2 + $0x34] sm:$0xf0] }
   0xc   :  { %v3343_v43 = vld [vmem:[%s5350_s2 + $0xc4] sm:$0xf0]  ;;  %653 = vmatpush.bf16.msra.mxu0 %v2320_v29  ;;  %v2504_v46 = vor.u32 %v3375_v41, %v2503_v40  ;;  %v2431_v49 = vld [vmem:[%s5350_s2 + $0x130] sm:$0xf]  ;;  %v3357_v51 = vld [vmem:[%s5350_s2 + $0x134] sm:$0xf0]  ;;  %v2304_v56 = vor.u32 %v3325_v48, %v2303_v47 }
   0xd   :  { %679 = vmatpush.bf16.msra.mxu2 %v2448_v33  ;;  %v2376_v50 = vor.u32 %v3343_v43, %v2375_v42  ;;  %v2495_v52 = vld [vmem:[%s5350_s2 + $0x1b0] sm:$0xf]  ;;  %v3373_v53 = vld [vmem:[%s5350_s2 + $0x1b4] sm:$0xf0]  ;;  %v2432_v57 = vor.u32 %v3357_v51, %v2431_v49  ;;  %v2295_v59 = vld [vmem:[%s5350_s2 + $0x20] sm:$0xf] }
   0xe   :  { %692 = vmatpush.bf16.msra.mxu3 %v2512_v34  ;;  %v2367_v54 = vld [vmem:[%s5350_s2 + $0xb0] sm:$0xf]  ;;  %v3341_v55 = vld [vmem:[%s5350_s2 + $0xb4] sm:$0xf0]  ;;  %v2496_v58 = vor.u32 %v3373_v53, %v2495_v52  ;;  %v3323_v60 = vld [vmem:[%s5350_s2 + $0x24] sm:$0xf0] }
   0xf   :  { %666 = vmatpush.bf16.msra.mxu1 %v2384_v38  ;;  %v2423_v61 = vld [vmem:[%s5350_s2 + $0x120] sm:$0xf]  ;;  %v2368_v62 = vor.u32 %v3341_v55, %v2367_v54  ;;  %v3355_v63 = vld [vmem:[%s5350_s2 + $0x124] sm:$0xf0]  ;;  %v2296_v4 = vor.u32 %v3323_v60, %v2295_v59  ;;  %v2287_v7 = vld [vmem:[%s5350_s2 + $0x10] sm:$0xf] }
  0x10   :  { %654 = vmatpush.bf16.msra.mxu0 %v2312_v44  ;;  %v2487_v0 = vld [vmem:[%s5350_s2 + $0x1a0] sm:$0xf]  ;;  %v3371_v1 = vld [vmem:[%s5350_s2 + $0x1a4] sm:$0xf0]  ;;  %v2424_v5 = vor.u32 %v3355_v63, %v2423_v61  ;;  %v3321_v8 = vld [vmem:[%s5350_s2 + $0x14] sm:$0xf0] }
  0x11   :  { %680 = vmatpush.bf16.msra.mxu2 %v2440_v45  ;;  %v2359_v2 = vld [vmem:[%s5350_s2 + $0xa0] sm:$0xf]  ;;  %v3339_v3 = vld [vmem:[%s5350_s2 + $0xa4] sm:$0xf0]  ;;  %v2488_v6 = vor.u32 %v3371_v1, %v2487_v0  ;;  %v2415_v9 = vld [vmem:[%s5350_s2 + $0x110] sm:$0xf]  ;;  %v2288_v16 = vor.u32 %v3321_v8, %v2287_v7 }
  0x12   :  { %693 = vmatpush.bf16.msra.mxu3 %v2504_v46  ;;  %v2360_v10 = vor.u32 %v3339_v3, %v2359_v2  ;;  %v3353_v11 = vld [vmem:[%s5350_s2 + $0x114] sm:$0xf0]  ;;  %v2479_v12 = vld [vmem:[%s5350_s2 + $0x190] sm:$0xf]  ;;  %v2279_v17 = vld [vmem:[%s5350_s2] sm:$0xf] }
  0x13   :  { %667 = vmatpush.bf16.msra.mxu1 %v2376_v50  ;;  %v3369_v13 = vld [vmem:[%s5350_s2 + $0x194] sm:$0xf0]  ;;  %v2351_v14 = vld [vmem:[%s5350_s2 + $0x90] sm:$0xf]  ;;  %v3319_v18 = vld [vmem:[%s5350_s2 + $0x4] sm:$0xf0]  ;;  %v2416_v20 = vor.u32 %v3353_v11, %v2415_v9 }
  0x14   :  { %655 = vmatpush.bf16.msra.mxu0 %v2304_v56  ;;  %v3337_v15 = vld [vmem:[%s5350_s2 + $0x94] sm:$0xf0]  ;;  %v2407_v19 = vld [vmem:[%s5350_s2 + $0x100] sm:$0xf]  ;;  %v2480_v21 = vor.u32 %v3369_v13, %v2479_v12  ;;  %v3351_v22 = vld [vmem:[%s5350_s2 + $0x104] sm:$0xf0]  ;;  %v2280_v32 = vor.u32 %v3319_v18, %v2279_v17 }
  0x15   :  { %681 = vmatpush.bf16.msra.mxu2 %v2432_v57  ;;  %v2471_v23 = vld [vmem:[%s5350_s2 + $0x180] sm:$0xf]  ;;  %v3367_v24 = vld [vmem:[%s5350_s2 + $0x184] sm:$0xf0]  ;;  %v2352_v25 = vor.u32 %v3337_v15, %v2351_v14  ;;  %v2591_v26 = vld [vmem:[%s5350_s2 + $0x270] sm:$0xf]  ;;  %v2408_v36 = vor.u32 %v3351_v22, %v2407_v19 }
  0x16   :  { %694 = vmatpush.bf16.msra.mxu3 %v2496_v58  ;;  %v3397_v27 = vld [vmem:[%s5350_s2 + $0x274] sm:$0xf0]  ;;  %v3332_v28 = vld [vmem:[%s5350_s2 + $0x74] sm:$0xf]  ;;  %v2337_v29 = vld [vmem:[%s5350_s2 + $0x78] sm:$0xf0]  ;;  %v2472_v37 = vor.u32 %v3367_v24, %v2471_v23 }
  0x17   :  { %668 = vmatpush.bf16.msra.mxu1 %v2368_v62  ;;  %v2343_v30 = vld [vmem:[%s5350_s2 + $0x80] sm:$0xf]  ;;  %v3335_v31 = vld [vmem:[%s5350_s2 + $0x84] sm:$0xf0]  ;;  %v40_v33 = vld [vmem:[%s5351_s0 + $0x10] sm:$0xff]  ;;  %v2592_v41 = vor.u32 %v3397_v27, %v2591_v26  ;;  %v2340_v42 = vor.u32 %v3332_v28, %v2337_v29 }
  0x18   :  { %656 = vmatpush.bf16.msra.mxu0 %v2296_v4  ;;  %v2663_v34 = vld [vmem:[%s5350_s2 + $0x300] sm:$0xf]  ;;  %v3415_v35 = vld [vmem:[%s5350_s2 + $0x304] sm:$0xf0]  ;;  %v2655_v38 = vld [vmem:[%s5350_s2 + $0x2f0] sm:$0xf]  ;;  %v2344_v46 = vor.u32 %v3335_v31, %v2343_v30  ;;  %v3906_v51 = vpack.c.bf16 %v40_v33, %v40_v33 }
  0x19   :  { %682 = vmatpush.bf16.msra.mxu2 %v2424_v5  ;;  %v3413_v39 = vld [vmem:[%s5350_s2 + $0x2f4] sm:$0xf0]  ;;  %v3348_v40 = vld [vmem:[%s5350_s2 + $0xf4] sm:$0xf]  ;;  %v2401_v43 = vld [vmem:[%s5350_s2 + $0xf8] sm:$0xf0]  ;;  %v2664_v47 = vor.u32 %v3415_v35, %v2663_v34 }
  0x1a   :  { %695 = vmatpush.bf16.msra.mxu3 %v2488_v6  ;;  %v2583_v44 = vld [vmem:[%s5350_s2 + $0x260] sm:$0xf]  ;;  %v3395_v48 = vld [vmem:[%s5350_s2 + $0x264] sm:$0xf0]  ;;  %v3330_v49 = vld [vmem:[%s5350_s2 + $0x64] sm:$0xf]  ;;  %v2656_v52 = vor.u32 %v3413_v39, %v2655_v38  ;;  %v2404_v55 = vor.u32 %v3348_v40, %v2401_v43 }
  0x1b   :  { %669 = vmatpush.bf16.msra.mxu1 %v2360_v10  ;;  %v38_v45 = vld [vmem:[%s5351_s0] sm:$0xff]  ;;  %v2329_v50 = vld [vmem:[%s5350_s2 + $0x68] sm:$0xf0]  ;;  %v41_v53 = vld [vmem:[%s5351_s0 + $0x18] sm:$0xff]  ;;  %v2584_v59 = vor.u32 %v3395_v48, %v2583_v44 }
  0x1c   :  { %657 = vmatpush.bf16.msra.mxu0 %v2288_v16  ;;  %v39_v54 = vld [vmem:[%s5351_s0 + $0x8] sm:$0xff]  ;;  %v2647_v56 = vld [vmem:[%s5350_s2 + $0x2e0] sm:$0xf]  ;;  %v3920_v58 = vpack.c.bf16 %v38_v45, %v38_v45  ;;  %v2332_v60 = vor.u32 %v3330_v49, %v2329_v50  ;;  %v3346_v61 = vld [vmem:[%s5350_s2 + $0xe4] sm:$0xf]  ;;  %v3940_v3 = vpack.c.bf16 %v41_v53, %v41_v53 }
  0x1d   :  { %683 = vmatpush.bf16.msra.mxu2 %v2416_v20  ;;  %v3411_v57 = vld [vmem:[%s5350_s2 + $0x2e4] sm:$0xf0]  ;;  %v2393_v62 = vld [vmem:[%s5350_s2 + $0xe8] sm:$0xf0]  ;;  %v2575_v63 = vld [vmem:[%s5350_s2 + $0x250] sm:$0xf]  ;;  %v3942_v4 = vpack.c.bf16 %v39_v54, %v39_v54 }
  0x1e   :  { %696 = vmatpush.bf16.msra.mxu3 %v2480_v21  ;;  %v3393_v0 = vld [vmem:[%s5350_s2 + $0x254] sm:$0xf0]  ;;  %v3328_v1 = vld [vmem:[%s5350_s2 + $0x54] sm:$0xf]  ;;  %v2321_v2 = vld [vmem:[%s5350_s2 + $0x58] sm:$0xf0]  ;;  %v2648_v5 = vor.u32 %v3411_v57, %v2647_v56  ;;  %v2396_v6 = vor.u32 %v3346_v61, %v2393_v62 }
  0x1f   :  { %670 = vmatpush.bf16.msra.mxu1 %v2352_v25  ;;  %v2639_v7 = vld [vmem:[%s5350_s2 + $0x2d0] sm:$0xf]  ;;  %v3409_v8 = vld [vmem:[%s5350_s2 + $0x2d4] sm:$0xf0]  ;;  %v2576_v9 = vor.u32 %v3393_v0, %v2575_v63  ;;  %v2324_v10 = vor.u32 %v3328_v1, %v2321_v2  ;;  %v3344_v11 = vld [vmem:[%s5350_s2 + $0xd4] sm:$0xf] }
  0x20   :  { %658 = vmatpush.bf16.msra.mxu0 %v2280_v32  ;;  %v2385_v12 = vld [vmem:[%s5350_s2 + $0xd8] sm:$0xf0]  ;;  %v2567_v13 = vld [vmem:[%s5350_s2 + $0x240] sm:$0xf]  ;;  %v3391_v14 = vld [vmem:[%s5350_s2 + $0x244] sm:$0xf0]  ;;  %v2640_v17 = vor.u32 %v3409_v8, %v2639_v7 }
  0x21   :  { %684 = vmatpush.bf16.msra.mxu2 %v2408_v36  ;;  %v3326_v15 = vld [vmem:[%s5350_s2 + $0x44] sm:$0xf]  ;;  %v2313_v16 = vld [vmem:[%s5350_s2 + $0x48] sm:$0xf0]  ;;  %v2388_v18 = vor.u32 %v3344_v11, %v2385_v12  ;;  %v2631_v19 = vld [vmem:[%s5350_s2 + $0x2c0] sm:$0xf]  ;;  %v2568_v21 = vor.u32 %v3391_v14, %v2567_v13 }
  0x22   :  { %697 = vmatpush.bf16.msra.mxu3 %v2472_v37  ;;  %v3407_v20 = vld [vmem:[%s5350_s2 + $0x2c4] sm:$0xf0]  ;;  %v2316_v22 = vor.u32 %v3326_v15, %v2313_v16  ;;  %v3342_v23 = vld [vmem:[%s5350_s2 + $0xc4] sm:$0xf]  ;;  %v2377_v24 = vld [vmem:[%s5350_s2 + $0xc8] sm:$0xf0] }
  0x23   :  { %671 = vmatpush.bf16.msra.mxu1 %v2344_v46  ;;  %659 = vmatmul.bf16.vlgmr.msra.gmra.mxu0 %v3920_v58  ;;  %v2559_v25 = vld [vmem:[%s5350_s2 + $0x230] sm:$0xf]  ;;  %v3389_v26 = vld [vmem:[%s5350_s2 + $0x234] sm:$0xf0]  ;;  %v3324_v27 = vld [vmem:[%s5350_s2 + $0x34] sm:$0xf]  ;;  %v2632_v29 = vor.u32 %v3407_v20, %v2631_v19  ;;  %v2380_v30 = vor.u32 %v3342_v23, %v2377_v24 }
  0x24   :  { %703 = vmatpush.bf16.msrb.mxu0 %v2592_v41  ;;  %685 = vmatmul.bf16.vlgmr.msra.gmra.mxu2 %v3906_v51  ;;  %v2305_v28 = vld [vmem:[%s5350_s2 + $0x38] sm:$0xf0]  ;;  %v2623_v31 = vld [vmem:[%s5350_s2 + $0x2b0] sm:$0xf]  ;;  %v3405_v32 = vld [vmem:[%s5350_s2 + $0x2b4] sm:$0xf0]  ;;  %v2560_v34 = vor.u32 %v3389_v26, %v2559_v25 }
  0x25   :  { %736 = vmatpush.bf16.msrb.mxu2 %v2664_v47  ;;  %698 = vmatmul.bf16.vlgmr.msra.gmra.mxu3 %v3940_v3  ;;  %v44_v33 = vld [vmem:[%s5351_s0 + $0x30] sm:$0xff]  ;;  %v2308_v35 = vor.u32 %v3324_v27, %v2305_v28  ;;  %v2369_v37 = vld [vmem:[%s5350_s2 + $0xb8] sm:$0xf0]  ;;  %v2551_v38 = vld [vmem:[%s5350_s2 + $0x220] sm:$0xf] }
  0x26   :  { %742 = vmatpush.bf16.msrb.mxu3 %v2340_v42  ;;  %672 = vmatmul.bf16.vlgmr.msra.gmra.mxu1 %v3942_v4  ;;  %v3340_v36 = vld [vmem:[%s5350_s2 + $0xb4] sm:$0xf]  ;;  %v3387_v39 = vld [vmem:[%s5350_s2 + $0x224] sm:$0xf0]  ;;  %v3322_v40 = vld [vmem:[%s5350_s2 + $0x24] sm:$0xf]  ;;  %v2624_v42 = vor.u32 %v3405_v32, %v2623_v31  ;;  %v4023_v43 = vpack.c.bf16 %v44_v33, %v44_v33 }
  0x27   :  { %716 = vmatpush.bf16.msrb.mxu1 %v2656_v52  ;;  %v2297_v41 = vld [vmem:[%s5350_s2 + $0x28] sm:$0xf0]  ;;  %v2372_v44 = vor.u32 %v3340_v36, %v2369_v37  ;;  %v2615_v45 = vld [vmem:[%s5350_s2 + $0x2a0] sm:$0xf]  ;;  %v3403_v46 = vld [vmem:[%s5350_s2 + $0x2a4] sm:$0xf0]  ;;  %v2552_v47 = vor.u32 %v3387_v39, %v2551_v38 }
  0x28   :  { %704 = vmatpush.bf16.msrb.mxu0 %v2584_v59  ;;  %v2300_v48 = vor.u32 %v3322_v40, %v2297_v41  ;;  %v3338_v49 = vld [vmem:[%s5350_s2 + $0xa4] sm:$0xf]  ;;  %v2361_v50 = vld [vmem:[%s5350_s2 + $0xa8] sm:$0xf0]  ;;  %v2543_v52 = vld [vmem:[%s5350_s2 + $0x210] sm:$0xf]  ;;  %v2616_v56 = vor.u32 %v3403_v46, %v2615_v45 }
  0x29   :  { %755 = vmatpush.bf16.msra.mxu2 %v2404_v55  ;;  %v3385_v53 = vld [vmem:[%s5350_s2 + $0x214] sm:$0xf0]  ;;  %v3320_v54 = vld [vmem:[%s5350_s2 + $0x14] sm:$0xf]  ;;  %v2289_v55 = vld [vmem:[%s5350_s2 + $0x18] sm:$0xf0]  ;;  %v2364_v57 = vor.u32 %v3338_v49, %v2361_v50 }
  0x2a   :  { %743 = vmatpush.bf16.msrb.mxu3 %v2332_v60  ;;  %v2607_v59 = vld [vmem:[%s5350_s2 + $0x290] sm:$0xf]  ;;  %v3401_v60 = vld [vmem:[%s5350_s2 + $0x294] sm:$0xf0]  ;;  %v3336_v61 = vld [vmem:[%s5350_s2 + $0x94] sm:$0xf]  ;;  %v2544_v62 = vor.u32 %v3385_v53, %v2543_v52  ;;  %v2292_v63 = vor.u32 %v3320_v54, %v2289_v55 }
  0x2b   :  { %717 = vmatpush.bf16.msrb.mxu1 %v2648_v5  ;;  %v2353_v0 = vld [vmem:[%s5350_s2 + $0x98] sm:$0xf0]  ;;  %v2535_v1 = vld [vmem:[%s5350_s2 + $0x200] sm:$0xf]  ;;  %v3383_v2 = vld [vmem:[%s5350_s2 + $0x204] sm:$0xf0]  ;;  %v2608_v8 = vor.u32 %v3401_v60, %v2607_v59 }
  0x2c   :  { %705 = vmatpush.bf16.msrb.mxu0 %v2576_v9  ;;  %v3318_v5 = vld [vmem:[%s5350_s2 + $0x4] sm:$0xf]  ;;  %v3364_v7 = vld [vmem:[%s5350_s2 + $0x174] sm:$0xf]  ;;  %v2465_v9 = vld [vmem:[%s5350_s2 + $0x178] sm:$0xf0]  ;;  %v2356_v12 = vor.u32 %v3336_v61, %v2353_v0  ;;  %v2536_v16 = vor.u32 %v3383_v2, %v2535_v1 }
  0x2d   :  { %756 = vmatpush.bf16.msra.mxu2 %v2396_v6  ;;  %v2281_v6 = vld [vmem:[%s5350_s2 + $0x8] sm:$0xf0]  ;;  %v2593_v11 = vld [vmem:[%s5350_s2 + $0x278] sm:$0xf0]  ;;  %v2599_v13 = vld [vmem:[%s5350_s2 + $0x280] sm:$0xf] }
  0x2e   :  { %744 = vmatpush.bf16.msrb.mxu3 %v2324_v10  ;;  %v3396_v10 = vld [vmem:[%s5350_s2 + $0x274] sm:$0xf]  ;;  %v3399_v14 = vld [vmem:[%s5350_s2 + $0x284] sm:$0xf0]  ;;  %v42_v15 = vld [vmem:[%s5351_s0 + $0x20] sm:$0xff] }
  0x2f   :  { %718 = vmatpush.bf16.msrb.mxu1 %v2640_v17  ;;  %v2284_v17 = vor.u32 %v3318_v5, %v2281_v6  ;;  %v2345_v19 = vld [vmem:[%s5350_s2 + $0x88] sm:$0xf0]  ;;  %v3380_v20 = vld [vmem:[%s5350_s2 + $0x1f4] sm:$0xf]  ;;  %v2529_v23 = vld [vmem:[%s5350_s2 + $0x1f8] sm:$0xf0]  ;;  %v2600_v26 = vor.u32 %v3399_v14, %v2599_v13 }
  0x30   :  { %706 = vmatpush.bf16.msrb.mxu0 %v2568_v21  ;;  %v2468_v21 = vor.u32 %v3364_v7, %v2465_v9  ;;  %v3412_v24 = vld [vmem:[%s5350_s2 + $0x2f4] sm:$0xf]  ;;  %v2657_v25 = vld [vmem:[%s5350_s2 + $0x2f8] sm:$0xf0]  ;;  %v43_v27 = vld [vmem:[%s5351_s0 + $0x28] sm:$0xff] }
  0x31   :  { %757 = vmatpush.bf16.msra.mxu2 %v2388_v18  ;;  %v3334_v18 = vld [vmem:[%s5350_s2 + $0x84] sm:$0xf]  ;;  %v2585_v33 = vld [vmem:[%s5350_s2 + $0x268] sm:$0xf0]  ;;  %v4134_v37 = vpack.c.bf16 %v43_v27, %v43_v27  ;;  %v2449_v45 = vld [vmem:[%s5350_s2 + $0x158] sm:$0xf0] }
  0x32   :  { %745 = vmatpush.bf16.msrb.mxu3 %v2316_v22  ;;  %v2596_v22 = vor.u32 %v3396_v10, %v2593_v11  ;;  %v3362_v28 = vld [vmem:[%s5350_s2 + $0x164] sm:$0xf]  ;;  %v2348_v31 = vor.u32 %v3334_v18, %v2345_v19  ;;  %v2521_v39 = vld [vmem:[%s5350_s2 + $0x1e8] sm:$0xf0]  ;;  %v3392_v46 = vld [vmem:[%s5350_s2 + $0x254] sm:$0xf] }
  0x33   :  { %719 = vmatpush.bf16.msrb.mxu1 %v2632_v29  ;;  %v2457_v29 = vld [vmem:[%s5350_s2 + $0x168] sm:$0xf0]  ;;  %v3394_v32 = vld [vmem:[%s5350_s2 + $0x264] sm:$0xf]  ;;  %v3376_v50 = vld [vmem:[%s5350_s2 + $0x1d4] sm:$0xf] }
  0x34   :  { %707 = vmatpush.bf16.msrb.mxu0 %v2560_v34  ;;  %2669 = vmatmul.msk.bf16.vlgmr.msrb.gmra.mxu2 %vm647_vm0, %v4023_v43  ;;  %v2532_v34 = vor.u32 %v3380_v20, %v2529_v23  ;;  %v3378_v36 = vld [vmem:[%s5350_s2 + $0x1e4] sm:$0xf]  ;;  %v2460_v38 = vor.u32 %v3362_v28, %v2457_v29  ;;  %v2649_v41 = vld [vmem:[%s5350_s2 + $0x2e8] sm:$0xf0]  ;;  %v2513_v53 = vld [vmem:[%s5350_s2 + $0x1d8] sm:$0xf0] }
  0x35   :  { %758 = vmatpush.bf16.msra.mxu2 %v2380_v30  ;;  %v4123_v30 = vpack.c.bf16 %v42_v15, %v42_v15  ;;  %v3410_v40 = vld [vmem:[%s5350_s2 + $0x2e4] sm:$0xf]  ;;  %v3408_v54 = vld [vmem:[%s5350_s2 + $0x2d4] sm:$0xf]  ;;  %v2641_v55 = vld [vmem:[%s5350_s2 + $0x2d8] sm:$0xf0] }
  0x36   :  { %746 = vmatpush.bf16.msrb.mxu3 %v2308_v35  ;;  %v2660_v35 = vor.u32 %v3412_v24, %v2657_v25  ;;  %v2652_v49 = vor.u32 %v3410_v40, %v2649_v41  ;;  %v2441_v59 = vld [vmem:[%s5350_s2 + $0x148] sm:$0xf0]  ;;  %v3390_v60 = vld [vmem:[%s5350_s2 + $0x244] sm:$0xf]  ;;  %v3356_v6 = vld [vmem:[%s5350_s2 + $0x134] sm:$0xf] }
  0x37   :  { %720 = vmatpush.bf16.msrb.mxu1 %v2624_v42  ;;  %v2588_v42 = vor.u32 %v3394_v32, %v2585_v33  ;;  %v2569_v61 = vld [vmem:[%s5350_s2 + $0x248] sm:$0xf0]  ;;  %v3374_v0 = vld [vmem:[%s5350_s2 + $0x1c4] sm:$0xf]  ;;  %v2433_v7 = vld [vmem:[%s5350_s2 + $0x138] sm:$0xf0] }
  0x38   :  { %708 = vmatpush.bf16.msrb.mxu0 %v2552_v47  ;;  %v2577_v47 = vld [vmem:[%s5350_s2 + $0x258] sm:$0xf0]  ;;  %v2505_v1 = vld [vmem:[%s5350_s2 + $0x1c8] sm:$0xf0]  ;;  %v3406_v2 = vld [vmem:[%s5350_s2 + $0x2c4] sm:$0xf]  ;;  %v2572_v5 = vor.u32 %v3390_v60, %v2569_v61  ;;  %v2436_v13 = vor.u32 %v3356_v6, %v2433_v7 }
  0x39   :  { %759 = vmatpush.bf16.msra.mxu2 %v2372_v44  ;;  %v3360_v44 = vld [vmem:[%s5350_s2 + $0x154] sm:$0xf]  ;;  %v2561_v9 = vld [vmem:[%s5350_s2 + $0x238] sm:$0xf0]  ;;  %v2508_v10 = vor.u32 %v3374_v0, %v2505_v1  ;;  %v3354_v18 = vld [vmem:[%s5350_s2 + $0x124] sm:$0xf] }
  0x3a   :  { %747 = vmatpush.bf16.msrb.mxu3 %v2300_v48  ;;  %v2524_v48 = vor.u32 %v3378_v36, %v2521_v39  ;;  %v2452_v52 = vor.u32 %v3360_v44, %v2449_v45  ;;  %v2497_v14 = vld [vmem:[%s5350_s2 + $0x1b8] sm:$0xf0]  ;;  %v3404_v15 = vld [vmem:[%s5350_s2 + $0x2b4] sm:$0xf]  ;;  %v2425_v19 = vld [vmem:[%s5350_s2 + $0x128] sm:$0xf0] }
  0x3b   :  { %721 = vmatpush.bf16.msrb.mxu1 %v2616_v56  ;;  %v2580_v56 = vor.u32 %v3392_v46, %v2577_v47  ;;  %v3386_v20 = vld [vmem:[%s5350_s2 + $0x224] sm:$0xf]  ;;  %v2428_v25 = vor.u32 %v3354_v18, %v2425_v19  ;;  %v2617_v28 = vld [vmem:[%s5350_s2 + $0x2a8] sm:$0xf0]  ;;  %v2417_v32 = vld [vmem:[%s5350_s2 + $0x118] sm:$0xf0] }
  0x3c   :  { %709 = vmatpush.bf16.msrb.mxu0 %v2544_v62  ;;  %v2516_v62 = vor.u32 %v3376_v50, %v2513_v53  ;;  %v3370_v24 = vld [vmem:[%s5350_s2 + $0x1a4] sm:$0xf]  ;;  %v3384_v33 = vld [vmem:[%s5350_s2 + $0x214] sm:$0xf]  ;;  %v2481_v40 = vld [vmem:[%s5350_s2 + $0x198] sm:$0xf0] }
  0x3d   :  { %760 = vmatpush.bf16.msra.mxu2 %v2364_v57  ;;  %v3358_v57 = vld [vmem:[%s5350_s2 + $0x144] sm:$0xf]  ;;  %v3400_v41 = vld [vmem:[%s5350_s2 + $0x294] sm:$0xf]  ;;  %v2409_v46 = vld [vmem:[%s5350_s2 + $0x108] sm:$0xf0] }
  0x3e   :  { %748 = vmatpush.bf16.msrb.mxu3 %v2292_v63  ;;  %v2644_v63 = vor.u32 %v3408_v54, %v2641_v55  ;;  %v3402_v27 = vld [vmem:[%s5350_s2 + $0x2a4] sm:$0xf]  ;;  %v2665_v50 = vld [vmem:[%s5350_s2 + $0x308] sm:$0xf0]  ;;  %v2729_v0 = vld [vmem:[%s5352_s4 + $0x70] sm:$0xf] }
  0x3f   :  { %722 = vmatpush.bf16.msrb.mxu1 %v2608_v8  ;;  %v3388_v8 = vld [vmem:[%s5350_s2 + $0x234] sm:$0xf]  ;;  %v2620_v36 = vor.u32 %v3402_v27, %v2617_v28  ;;  %v3350_v45 = vld [vmem:[%s5350_s2 + $0x104] sm:$0xf]  ;;  %v2601_v60 = vld [vmem:[%s5350_s2 + $0x288] sm:$0xf0] }
  0x40   :  { %710 = vmatpush.bf16.msrb.mxu0 %v2536_v16  ;;  %v2625_v16 = vld [vmem:[%s5350_s2 + $0x2b8] sm:$0xf0]  ;;  %v3382_v47 = vld [vmem:[%s5350_s2 + $0x204] sm:$0xf]  ;;  %v2412_v54 = vor.u32 %v3350_v45, %v2409_v46  ;;  %v2713_v7 = vld [vmem:[%s5352_s4 + $0x50] sm:$0xf] }
  0x41   :  { %761 = vmatpush.bf16.msra.mxu2 %v2356_v12  ;;  %v3372_v12 = vld [vmem:[%s5350_s2 + $0x1b4] sm:$0xf]  ;;  %v2628_v23 = vor.u32 %v3404_v15, %v2625_v16  ;;  %v3366_v55 = vld [vmem:[%s5350_s2 + $0x184] sm:$0xf]  ;;  %v2707_v16 = vld [vmem:[%s5352_s4 + $0x48] sm:$0xf0] }
  0x42   :  { %749 = vmatpush.bf16.msrb.mxu3 %v2284_v17  ;;  %v2564_v17 = vor.u32 %v3388_v8, %v2561_v9  ;;  %v3427_v8 = vld [vmem:[%s5352_s4 + $0x54] sm:$0xf0]  ;;  %v3426_v9 = vld [vmem:[%s5352_s4 + $0x54] sm:$0xf]  ;;  %v3424_v15 = vld [vmem:[%s5352_s4 + $0x44] sm:$0xf] }
  0x43   :  { %723 = vmatpush.bf16.msrb.mxu1 %v2600_v26  ;;  %711 = vmatmul.bf16.vlgmr.msrb.gmra.mxu0 %v4123_v30  ;;  %v2489_v26 = vld [vmem:[%s5350_s2 + $0x1a8] sm:$0xf0]  ;;  %v2710_v18 = vor.u32 %v3424_v15, %v2707_v16  ;;  %v2697_v19 = vld [vmem:[%s5352_s4 + $0x30] sm:$0xf]  ;;  %v3420_v27 = vld [vmem:[%s5352_s4 + $0x24] sm:$0xf] }
  0x44   :  { %768 = vmatpush.bf16.msra.mxu0 %v2468_v21  ;;  %v2553_v21 = vld [vmem:[%s5350_s2 + $0x228] sm:$0xf0] }
  0x45   :  { %762 = vmatpush.bf16.msra.mxu2 %v2348_v31  ;;  %750 = vmatmul.bf16.vlgmr.msrb.gmra.mxu3 %v3920_v58  ;;  %v2633_v58 = vld [vmem:[%s5350_s2 + $0x2c8] sm:$0xf0]  ;;  %v2556_v29 = vor.u32 %v3386_v20, %v2553_v21  ;;  %v3352_v31 = vld [vmem:[%s5350_s2 + $0x114] sm:$0xf]  ;;  %v3423_v20 = vld [vmem:[%s5352_s4 + $0x34] sm:$0xf0] }
  0x46   :  { %794 = vmatpush.bf16.msra.mxu3 %v2596_v22  ;;  %724 = vmatmul.bf16.vlgmr.msrb.gmra.mxu1 %v4134_v37  ;;  %v2636_v11 = vor.u32 %v3406_v2, %v2633_v58  ;;  %v2500_v22 = vor.u32 %v3372_v12, %v2497_v14  ;;  %v2420_v39 = vor.u32 %v3352_v31, %v2417_v32  ;;  %v3428_v2 = vld [vmem:[%s5352_s4 + $0x64] sm:$0xf]  ;;  %v2705_v12 = vld [vmem:[%s5352_s4 + $0x40] sm:$0xf]  ;;  %v3422_v21 = vld [vmem:[%s5352_s4 + $0x34] sm:$0xf] }
  0x47   :  { %781 = vmatpush.bf16.msra.mxu1 %v2532_v34  ;;  %v2545_v34 = vld [vmem:[%s5350_s2 + $0x218] sm:$0xf0]  ;;  %v2681_v32 = vld [vmem:[%s5352_s4 + $0x10] sm:$0xf]  ;;  %v2675_v46 = vld [vmem:[%s5352_s4 + $0x8] sm:$0xf0] }
  0x48   :  { %769 = vmatpush.bf16.msra.mxu0 %v2460_v38  ;;  %763 = vmatmul.bf16.vlgmr.msra.gmra.mxu2 %v3942_v4  ;;  %v2444_v4 = vor.u32 %v3358_v57, %v2441_v59  ;;  %v3368_v38 = vld [vmem:[%s5350_s2 + $0x194] sm:$0xf]  ;;  %v2548_v44 = vor.u32 %v3384_v33, %v2545_v34  ;;  %v3398_v59 = vld [vmem:[%s5350_s2 + $0x284] sm:$0xf]  ;;  %v3419_v33 = vld [vmem:[%s5352_s4 + $0x14] sm:$0xf0] }
  0x49   :  { %807 = vmatpush.bf16.msrb.mxu2 %v2660_v35  ;;  %v2492_v35 = vor.u32 %v3370_v24, %v2489_v26  ;;  %v3421_v26 = vld [vmem:[%s5352_s4 + $0x24] sm:$0xf0]  ;;  %v3418_v34 = vld [vmem:[%s5352_s4 + $0x14] sm:$0xf] }
  0x4a   :  { %795 = vmatpush.bf16.msra.mxu3 %v2588_v42  ;;  %v2609_v42 = vld [vmem:[%s5350_s2 + $0x298] sm:$0xf0] }
  0x4b   :  { %782 = vmatpush.bf16.msra.mxu1 %v2524_v48  ;;  %v2537_v48 = vld [vmem:[%s5350_s2 + $0x208] sm:$0xf0]  ;;  %v2612_v53 = vor.u32 %v3400_v41, %v2609_v42  ;;  %v2673_v41 = vld [vmem:[%s5352_s4] sm:$0xf]  ;;  %v3417_v42 = vld [vmem:[%s5352_s4 + $0x4] sm:$0xf0] }
  0x4c   :  { %770 = vmatpush.bf16.msra.mxu0 %v2452_v52  ;;  %v2484_v52 = vor.u32 %v3368_v38, %v2481_v40  ;;  %v2540_v57 = vor.u32 %v3382_v47, %v2537_v48  ;;  %v2674_v45 = vor.u32 %v3417_v42, %v2673_v41 }
  0x4d   :  { %808 = vmatpush.bf16.msrb.mxu2 %v2652_v49  ;;  %v3414_v49 = vld [vmem:[%s5350_s2 + $0x304] sm:$0xf] }
  0x4e   :  { %796 = vmatpush.bf16.msra.mxu3 %v2580_v56  ;;  %v2473_v56 = vld [vmem:[%s5350_s2 + $0x188] sm:$0xf0]  ;;  %v2668_v61 = vor.u32 %v3414_v49, %v2665_v50  ;;  %v4404_v49 = vld [vmem:[%s5353_s3] sm:$0x3] }
  0x4f   :  { %783 = vmatpush.bf16.msra.mxu1 %v2516_v62  ;;  %v2476_v62 = vor.u32 %v3366_v55, %v2473_v56  ;;  %v3446_v55 = vld [vmem:[%s5352_s4 + $0xf4] sm:$0xf] }
  0x50   :  { %771 = vmatpush.bf16.msra.mxu0 %v2444_v4  ;;  %v3431_v4 = vld [vmem:[%s5352_s4 + $0x74] sm:$0xf0] }
  0x51   :  { %809 = vmatpush.bf16.msrb.mxu2 %v2644_v63  ;;  %v2604_v63 = vor.u32 %v3398_v59, %v2601_v60  ;;  %v2730_v1 = vor.u32 %v3431_v4, %v2729_v0  ;;  %v2795_v59 = vld [vmem:[%s5352_s4 + $0xf8] sm:$0xf0]  ;;  %v153_v60 = vperm.slane %v4404_v49, 0  ;;  %v3445_v0 = vld [vmem:[%s5352_s4 + $0xe4] sm:$0xf0] }
  0x52   :  { %797 = vmatpush.bf16.msra.mxu3 %v2572_v5  ;;  %v2723_v5 = vld [vmem:[%s5352_s4 + $0x68] sm:$0xf0]  ;;  %v3444_v4 = vld [vmem:[%s5352_s4 + $0xe4] sm:$0xf] }
  0x53   :  { %784 = vmatpush.bf16.msra.mxu1 %v2508_v10  ;;  %v2726_v6 = vor.u32 %v3428_v2, %v2723_v5  ;;  %v2714_v10 = vor.u32 %v3427_v8, %v2713_v7  ;;  %v2777_v5 = vld [vmem:[%s5352_s4 + $0xd0] sm:$0xf]  ;;  %v3442_v7 = vld [vmem:[%s5352_s4 + $0xd4] sm:$0xf] }
  0x54   :  { %772 = vmatpush.bf16.msra.mxu0 %v2436_v13  ;;  %v3425_v13 = vld [vmem:[%s5352_s4 + $0x44] sm:$0xf0] }
  0x55   :  { %810 = vmatpush.bf16.msrb.mxu2 %v2636_v11  ;;  %v2715_v11 = vld [vmem:[%s5352_s4 + $0x58] sm:$0xf0] }
  0x56   :  { %798 = vmatpush.bf16.msra.mxu3 %v2564_v17  ;;  %v2718_v14 = vor.u32 %v3426_v9, %v2715_v11  ;;  %v2706_v17 = vor.u32 %v3425_v13, %v2705_v12  ;;  %v2779_v9 = vld [vmem:[%s5352_s4 + $0xd8] sm:$0xf0]  ;;  %v2769_v12 = vld [vmem:[%s5352_s4 + $0xc0] sm:$0xf]  ;;  %v3441_v13 = vld [vmem:[%s5352_s4 + $0xc4] sm:$0xf0] }
  0x57   :  { %785 = vmatpush.bf16.msra.mxu1 %v2500_v22  ;;  %v2699_v22 = vld [vmem:[%s5352_s4 + $0x38] sm:$0xf0]  ;;  %v2770_v16 = vor.u32 %v3441_v13, %v2769_v12  ;;  %v2857_v12 = vld [vmem:[%s5354_s6 + $0x70] sm:$0xf]  ;;  %v3463_v13 = vld [vmem:[%s5354_s6 + $0x74] sm:$0xf0] }
  0x58   :  { %773 = vmatpush.bf16.msra.mxu0 %v2428_v25  ;;  %v2702_v24 = vor.u32 %v3422_v21, %v2699_v22  ;;  %v2689_v25 = vld [vmem:[%s5352_s4 + $0x20] sm:$0xf] }
  0x59   :  { %811 = vmatpush.bf16.msrb.mxu2 %v2628_v23  ;;  %v2698_v23 = vor.u32 %v3423_v20, %v2697_v19  ;;  %v2690_v28 = vor.u32 %v3421_v26, %v2689_v25  ;;  %v3438_v25 = vld [vmem:[%s5352_s4 + $0xb4] sm:$0xf] }
  0x5a   :  { %799 = vmatpush.bf16.msra.mxu3 %v2556_v29  ;;  %v2691_v29 = vld [vmem:[%s5352_s4 + $0x28] sm:$0xf0] }
  0x5b   :  { %786 = vmatpush.bf16.msra.mxu1 %v2492_v35  ;;  %v2694_v31 = vor.u32 %v3420_v27, %v2691_v29  ;;  %v2682_v35 = vor.u32 %v3419_v33, %v2681_v32  ;;  %v2763_v27 = vld [vmem:[%s5352_s4 + $0xb8] sm:$0xf0]  ;;  %v2753_v32 = vld [vmem:[%s5352_s4 + $0xa0] sm:$0xf]  ;;  %v3437_v33 = vld [vmem:[%s5352_s4 + $0xa4] sm:$0xf0] }
  0x5c   :  { %774 = vmatpush.bf16.msra.mxu0 %v2420_v39  ;;  %v2766_v29 = vor.u32 %v3438_v25, %v2763_v27  ;;  %v3459_v25 = vld [vmem:[%s5354_s6 + $0x54] sm:$0xf0]  ;;  %v2843_v27 = vld [vmem:[%s5354_s6 + $0x58] sm:$0xf0] }
  0x5d   :  { %812 = vmatpush.bf16.msrb.mxu2 %v2620_v36  ;;  %v2683_v36 = vld [vmem:[%s5352_s4 + $0x18] sm:$0xf0] }
  0x5e   :  { %800 = vmatpush.bf16.msra.mxu3 %v2548_v44  ;;  %v2686_v39 = vor.u32 %v3418_v34, %v2683_v36  ;;  %v3416_v44 = vld [vmem:[%s5352_s4 + $0x4] sm:$0xf] }
  0x5f   :  { %787 = vmatpush.bf16.msra.mxu1 %v2484_v52  ;;  %v2678_v47 = vor.u32 %v3416_v44, %v2675_v46  ;;  %v3436_v36 = vld [vmem:[%s5352_s4 + $0xa4] sm:$0xf]  ;;  %v3435_v46 = vld [vmem:[%s5352_s4 + $0x94] sm:$0xf0] }
  0x60   :  { %775 = vmatpush.bf16.msra.mxu0 %v2412_v54  ;;  %v3447_v54 = vld [vmem:[%s5352_s4 + $0xf4] sm:$0xf0] }
  0x61   :  { %813 = vmatpush.bf16.msrb.mxu2 %v2612_v53  ;;  %v2793_v53 = vld [vmem:[%s5352_s4 + $0xf0] sm:$0xf] }
  0x62   :  { %801 = vmatpush.bf16.msra.mxu3 %v2540_v57  ;;  %v2794_v57 = vor.u32 %v3447_v54, %v2793_v53  ;;  %v2737_v53 = vld [vmem:[%s5352_s4 + $0x80] sm:$0xf]  ;;  %v3433_v54 = vld [vmem:[%s5352_s4 + $0x84] sm:$0xf0] }
  0x63   :  { %788 = vmatpush.bf16.msra.mxu1 %v2476_v62  ;;  %776 = vmatmul.bf16.vlgmr.msra.gmra.mxu0 %v3906_v51  ;;  %v3430_v51 = vld [vmem:[%s5352_s4 + $0x74] sm:$0xf] }
  0x64   :  { %827 = vmatpush.bf16.msrb.mxu0 %v2668_v61  ;;  %v2798_v61 = vor.u32 %v3446_v55, %v2795_v59  ;;  %v3432_v55 = vld [vmem:[%s5352_s4 + $0x84] sm:$0xf] }
  0x65   :  { %802 = vmatmul.bf16.vlgmr.msra.gmra.mxu3 %v4123_v30  ;;  %814 = vmatpush.bf16.msrb.mxu2 %v2604_v63  ;;  %v2785_v63 = vld [vmem:[%s5352_s4 + $0xe0] sm:$0xf] }
  0x66   :  { %789 = vmatmul.bf16.vlgmr.msra.gmra.mxu1 %v3940_v3  ;;  %v2731_v3 = vld [vmem:[%s5352_s4 + $0x78] sm:$0xf0]  ;;  %1048 = vmatpush.bf16.msrb.mxu3 %v2794_v57  ;;  %v2739_v57 = vld [vmem:[%s5352_s4 + $0x88] sm:$0xf0] }
  0x67   :  { %v2734_v30 = vor.u32 %v3430_v51, %v2731_v3  ;;  %1035 = vmatpush.bf16.msrb.mxu1 %v2730_v1  ;;  %v2786_v51 = vor.u32 %v3445_v0, %v2785_v63  ;;  %v2787_v3 = vld [vmem:[%s5352_s4 + $0xe8] sm:$0xf0] }
  0x68   :  { %815 = vmatmul.bf16.vlgmr.msrb.gmra.mxu2 %v4134_v37  ;;  %v3429_v37 = vld [vmem:[%s5352_s4 + $0x64] sm:$0xf0] }
  0x69   :  { %1061 = vmatpush.bf16.msra.mxu0 %v2734_v30  ;;  %1074 = vmatpush.bf16.msra.mxu2 %v2798_v61 }
  0x6a   :  { %1049 = vmatpush.bf16.msrb.mxu3 %v2786_v51 }
  0x6d   :  { %1062 = vmatpush.bf16.msra.mxu0 %v2726_v6  ;;  %v3443_v6 = vld [vmem:[%s5352_s4 + $0xd4] sm:$0xf0] }
  0x6e   :  { %v2778_v8 = vor.u32 %v3443_v6, %v2777_v5 }
  0x70   :  { %1050 = vmatpush.bf16.msrb.mxu3 %v2778_v8 }
  0x71   :  { %1063 = vmatpush.bf16.msra.mxu0 %v2718_v14  ;;  %v3440_v14 = vld [vmem:[%s5352_s4 + $0xc4] sm:$0xf] }
  0x73   :  { %2670 = vmatmul.msk.bf16.vlgmr.msrb.gmra.mxu0 %vm647_vm0, %v4023_v43  ;;  %v2721_v43 = vld [vmem:[%s5352_s4 + $0x60] sm:$0xf] }
  0x74   :  { %v2722_v58 = vor.u32 %v3429_v37, %v2721_v43  ;;  %v2790_v43 = vor.u32 %v3444_v4, %v2787_v3  ;;  %1051 = vmatpush.bf16.msrb.mxu3 %v2770_v16  ;;  %v2859_v16 = vld [vmem:[%s5354_s6 + $0x78] sm:$0xf0] }
  0x75   :  { %1064 = vmatpush.bf16.msra.mxu0 %v2710_v18 }
  0x76   :  { %1036 = vmatpush.bf16.msrb.mxu1 %v2722_v58  ;;  %1075 = vmatpush.bf16.msra.mxu2 %v2790_v43 }
  0x79   :  { %1065 = vmatpush.bf16.msra.mxu0 %v2702_v24  ;;  %v3439_v24 = vld [vmem:[%s5352_s4 + $0xb4] sm:$0xf0] }
  0x7a   :  { %1037 = vmatpush.bf16.msrb.mxu1 %v2714_v10  ;;  %v2782_v10 = vor.u32 %v3442_v7, %v2779_v9 }
  0x7c   :  { %1076 = vmatpush.bf16.msra.mxu2 %v2782_v10 }
  0x7d   :  { %1066 = vmatpush.bf16.msra.mxu0 %v2694_v31 }
  0x7e   :  { %1038 = vmatpush.bf16.msrb.mxu1 %v2706_v17  ;;  %v2771_v17 = vld [vmem:[%s5352_s4 + $0xc8] sm:$0xf0] }
  0x7f   :  { %v2774_v20 = vor.u32 %v3440_v14, %v2771_v17  ;;  %v3462_v14 = vld [vmem:[%s5354_s6 + $0x74] sm:$0xf]  ;;  %v2849_v17 = vld [vmem:[%s5354_s6 + $0x60] sm:$0xf] }
  0x81   :  { %1067 = vmatpush.bf16.msra.mxu0 %v2686_v39  ;;  %1077 = vmatpush.bf16.msra.mxu2 %v2774_v20  ;;  %v3460_v20 = vld [vmem:[%s5354_s6 + $0x64] sm:$0xf] }
  0x82   :  { %1039 = vmatpush.bf16.msrb.mxu1 %v2698_v23  ;;  %v2761_v23 = vld [vmem:[%s5352_s4 + $0xb0] sm:$0xf] }
  0x83   :  { %v2762_v26 = vor.u32 %v3439_v24, %v2761_v23  ;;  %v2841_v24 = vld [vmem:[%s5354_s6 + $0x50] sm:$0xf] }
  0x85   :  { %1068 = vmatpush.bf16.msra.mxu0 %v2678_v47  ;;  %1052 = vmatpush.bf16.msrb.mxu3 %v2762_v26  ;;  %v3434_v47 = vld [vmem:[%s5352_s4 + $0x94] sm:$0xf] }
  0x86   :  { %1040 = vmatpush.bf16.msrb.mxu1 %v2690_v28  ;;  %1078 = vmatpush.bf16.msra.mxu2 %v2766_v29  ;;  %v3458_v26 = vld [vmem:[%s5354_s6 + $0x54] sm:$0xf] }
  0x87   :  { %v2846_v29 = vor.u32 %v3458_v26, %v2843_v27  ;;  %v3562_v26 = vld [vmem:[%s5355_s8 + $0x314] sm:$0xf]  ;;  %v3259_v27 = vld [vmem:[%s5355_s8 + $0x32c] sm:$0xf0] }
  0x8a   :  { %1041 = vmatpush.bf16.msrb.mxu1 %v2682_v35  ;;  %v2754_v35 = vor.u32 %v3437_v33, %v2753_v32 }
  0x8c   :  { %1053 = vmatpush.bf16.msrb.mxu3 %v2754_v35  ;;  %v2833_v35 = vld [vmem:[%s5354_s6 + $0x40] sm:$0xf] }
  0x8e   :  { %1042 = vmatpush.bf16.msrb.mxu1 %v2674_v45  ;;  %v2745_v45 = vld [vmem:[%s5352_s4 + $0x90] sm:$0xf] }
  0xa0   :  { %v660_v38 = vpop.f32.mrf.mxu0 }
  0xa1   :  { %v661_v1 = vadd.f32 %v660_v38, %v153_v60  ;;  %v2755_v38 = vld [vmem:[%s5352_s4 + $0xa8] sm:$0xf0]  ;;  %v2742_v60 = vor.u32 %v3432_v55, %v2739_v57  ;;  %v3451_v57 = vld [vmem:[%s5354_s6 + $0x14] sm:$0xf0] }
  0xa2   :  { %v2758_v41 = vor.u32 %v3436_v36, %v2755_v38  ;;  %v3457_v36 = vld [vmem:[%s5354_s6 + $0x44] sm:$0xf0]  ;;  %v3456_v38 = vld [vmem:[%s5354_s6 + $0x44] sm:$0xf]  ;;  %v2819_v55 = vld [vmem:[%s5354_s6 + $0x28] sm:$0xf0] }
  0xa3   :  { %v673_v40 = vpop.f32.mrf.mxu1 }
  0xa4   :  { %v674_v37 = vadd.f32 %v673_v40, %v661_v1  ;;  %1079 = vmatpush.bf16.msra.mxu2 %v2758_v41 }
  0xa7   :  { %v686_v48 = vpop.f32.mrf.mxu2 }
  0xa8   :  { %v699_v50 = vpop.f32.mrf.mxu3  ;;  %v662_v52 = vpop.f32.mrf.mxu0  ;;  %v687_v58 = vadd.f32 %v686_v48, %v674_v37  ;;  %v2746_v48 = vor.u32 %v3435_v46, %v2745_v45  ;;  %v3454_v45 = vld [vmem:[%s5354_s6 + $0x34] sm:$0xf] }
  0xaa   :  { %v700_v11 = vadd.f32 %v699_v50, %v687_v58  ;;  %v2747_v50 = vld [vmem:[%s5352_s4 + $0x98] sm:$0xf0]  ;;  %1054 = vmatpush.bf16.msrb.mxu3 %v2746_v48 }
  0xab   :  { %v675_v56 = vpop.f32.mrf.mxu1  ;;  %v2750_v52 = vor.u32 %v3434_v47, %v2747_v50  ;;  %v2827_v47 = vld [vmem:[%s5354_s6 + $0x38] sm:$0xf0]  ;;  %v2817_v50 = vld [vmem:[%s5354_s6 + $0x20] sm:$0xf] }
  0xac   :  { %v2738_v56 = vor.u32 %v3433_v54, %v2737_v53  ;;  %v2830_v48 = vor.u32 %v3454_v45, %v2827_v47  ;;  %v3452_v53 = vld [vmem:[%s5354_s6 + $0x24] sm:$0xf]  ;;  %v3231_v45 = vld [vmem:[%s5355_s8 + $0x2f4] sm:$0xf0] }
  0xad   :  { %1080 = vmatpush.bf16.msra.mxu2 %v2750_v52  ;;  %v3453_v52 = vld [vmem:[%s5354_s6 + $0x24] sm:$0xf0] }
  0xae   :  { %1055 = vmatpush.bf16.msrb.mxu3 %v2738_v56  ;;  %v2818_v54 = vor.u32 %v3453_v52, %v2817_v50  ;;  %v2809_v56 = vld [vmem:[%s5354_s6 + $0x10] sm:$0xf] }
  0xaf   :  { %v688_v62 = vpop.f32.mrf.mxu2 }
  0xb0   :  { %v701_v30 = vpop.f32.mrf.mxu3  ;;  %v154_v62 = vperm.slane %v4404_v49, 1 }
  0xb1   :  { %1081 = vmatpush.bf16.msra.mxu2 %v2742_v60  ;;  %v3450_v60 = vld [vmem:[%s5354_s6 + $0x14] sm:$0xf] }
  0xb7   :  { %v738_v2 = vpop.f32.mrf.mxu2 }
  0xbf   :  { %v740_v19 = vpop.f32.mrf.mxu2 }
  0xc0   :  { %v712_v15 = vpop.f32.mrf.mxu0  ;;  %v2862_v19 = vor.u32 %v3462_v14, %v2859_v16  ;;  %v3569_v14 = vld [vmem:[%s5355_s8 + $0x34c] sm:$0xf] }
  0xc1   :  { %v713_v18 = vadd.f32 %v712_v15, %v700_v11  ;;  %v2858_v15 = vor.u32 %v3463_v13, %v2857_v12  ;;  %v3572_v13 = vld [vmem:[%s5355_s8 + $0x360] sm:$0xf0] }
  0xc2   :  { %1208 = vmatpush.bf16.msra.mxu3 %v2862_v19  ;;  %v3005_v19 = vld [vmem:[%s5355_s8 + $0x118] sm:$0xf] }
  0xc3   :  { %v725_v21 = vpop.f32.mrf.mxu1  ;;  %1195 = vmatpush.bf16.msra.mxu1 %v2858_v15  ;;  %v3287_v15 = vld [vmem:[%s5355_s8 + $0x364] sm:$0xf0] }
  0xc4   :  { %v726_v22 = vadd.f32 %v725_v21, %v713_v18  ;;  %v3461_v18 = vld [vmem:[%s5354_s6 + $0x64] sm:$0xf0]  ;;  %v2851_v21 = vld [vmem:[%s5354_s6 + $0x68] sm:$0xf0] }
  0xc5   :  { %v2854_v23 = vor.u32 %v3460_v20, %v2851_v21  ;;  %v3502_v20 = vld [vmem:[%s5355_s8 + $0x130] sm:$0xf0]  ;;  %v3499_v21 = vld [vmem:[%s5355_s8 + $0x11c] sm:$0xf] }
  0xc6   :  { %v739_v28 = vadd.f32 %v738_v2, %v726_v22  ;;  %v2850_v22 = vor.u32 %v3461_v18, %v2849_v17  ;;  %v3290_v18 = vor.u32 %v3569_v14, %v3287_v15  ;;  %v3534_v14 = vld [vmem:[%s5355_s8 + $0x234] sm:$0xf]  ;;  %v3147_v15 = vld [vmem:[%s5355_s8 + $0x24c] sm:$0xf0] }
  0xc7   :  { %1209 = vmatpush.bf16.msra.mxu3 %v2854_v23  ;;  %v3257_v23 = vld [vmem:[%s5355_s8 + $0x310] sm:$0xf] }
  0xc8   :  { %v833_v31 = vmax.f32 %v739_v28, 0.0  ;;  %v714_v34 = vpop.f32.mrf.mxu0  ;;  %v751_v42 = vpop.f32.mrf.mxu3  ;;  %1196 = vmatpush.bf16.msra.mxu1 %v2850_v22  ;;  %v2842_v28 = vor.u32 %v3459_v25, %v2841_v24  ;;  %v3007_v22 = vld [vmem:[%s5355_s8 + $0x134] sm:$0xf0]  ;;  %v3565_v24 = vld [vmem:[%s5355_s8 + $0x328] sm:$0xf0] }
  0xc9   :  { %v752_v63 = vadd.f32 %v751_v42, %v154_v62  ;;  %v2825_v42 = vld [vmem:[%s5354_s6 + $0x30] sm:$0xf]  ;;  %v2810_v62 = vor.u32 %v3451_v57, %v2809_v56  ;;  %v3258_v25 = vor.u32 %v3565_v24, %v3257_v23  ;;  %v3203_v56 = vld [vmem:[%s5355_s8 + $0x2bc] sm:$0xf0] }
  0xca   :  { %v835_v39 = vpack.c.bf16 %v833_v31, %v833_v31  ;;  %v45_v23 = vld [vmem:[%s5358_s1] sm:$0xff] }
  0xcb   :  { %v764_v40 = vpop.f32.mrf.mxu2  ;;  %v727_v44 = vpop.f32.mrf.mxu1  ;;  %1210 = vmatpush.bf16.msra.mxu3 %v2846_v29 }
  0xcc   :  { %1043 = vmatmul.bf16.vlgmr.msrb.gmra.mxu1 %v835_v39  ;;  %1069 = vmatmul.bf16.vlgmr.msra.gmra.mxu0 %v835_v39  ;;  %v765_v4 = vadd.f32 %v764_v40, %v752_v63  ;;  %v2834_v39 = vor.u32 %v3457_v36, %v2833_v35  ;;  %v2835_v40 = vld [vmem:[%s5354_s6 + $0x48] sm:$0xf0]  ;;  %v3455_v44 = vld [vmem:[%s5354_s6 + $0x34] sm:$0xf0]  ;;  %v2977_v35 = vld [vmem:[%s5355_s8 + $0xe0] sm:$0xf] }
  0xcd   :  { %1197 = vmatpush.bf16.msra.mxu1 %v2842_v28  ;;  %v2838_v41 = vor.u32 %v3456_v38, %v2835_v40  ;;  %v2826_v46 = vor.u32 %v3455_v44, %v2825_v42  ;;  %v3495_v36 = vld [vmem:[%s5355_s8 + $0xf8] sm:$0xf0]  ;;  %v3010_v38 = vor.u32 %v3499_v21, %v3007_v22  ;;  %v3558_v40 = vld [vmem:[%s5355_s8 + $0x2f0] sm:$0xf0]  ;;  %v3492_v42 = vld [vmem:[%s5355_s8 + $0xe4] sm:$0xf] }
  0xce   :  { %v2979_v44 = vld [vmem:[%s5355_s8 + $0xfc] sm:$0xf0]  ;;  %v3471_v21 = vld [vmem:[%s5355_s8 + $0x3c] sm:$0xf]  ;;  %v2895_v22 = vld [vmem:[%s5355_s8 + $0x54] sm:$0xf0] }
  0xcf   :  { %1211 = vmatpush.bf16.msra.mxu3 %v2838_v41  ;;  %v3555_v41 = vld [vmem:[%s5355_s8 + $0x2dc] sm:$0xf] }
  0xd0   :  { %v753_v61 = vpop.f32.mrf.mxu3  ;;  %v3234_v47 = vor.u32 %v3555_v41, %v3231_v45  ;;  %v3069_v41 = vld [vmem:[%s5355_s8 + $0x190] sm:$0xf] }
  0xd1   :  { %1198 = vmatpush.bf16.msra.mxu1 %v2834_v39  ;;  %v2811_v61 = vld [vmem:[%s5354_s6 + $0x18] sm:$0xf0]  ;;  %v3229_v39 = vld [vmem:[%s5355_s8 + $0x2d8] sm:$0xf] }
  0xd2   :  { %v2814_v63 = vor.u32 %v3450_v60, %v2811_v61  ;;  %v3488_v60 = vld [vmem:[%s5355_s8 + $0xc0] sm:$0xf0] }
  0xd3   :  { %v766_v59 = vpop.f32.mrf.mxu2  ;;  %1212 = vmatpush.bf16.msra.mxu3 %v2830_v48  ;;  %v3201_v48 = vld [vmem:[%s5355_s8 + $0x2a0] sm:$0xf] }
  0xd4   :  { %v2822_v59 = vor.u32 %v3452_v53, %v2819_v55  ;;  %v2978_v53 = vor.u32 %v3495_v36, %v2977_v35  ;;  %v3548_v55 = vld [vmem:[%s5355_s8 + $0x2a4] sm:$0xf]  ;;  %v2865_v35 = vld [vmem:[%s5355_s8] sm:$0xf]  ;;  %v3467_v36 = vld [vmem:[%s5355_s8 + $0x18] sm:$0xf0] }
  0xd5   :  { %1199 = vmatpush.bf16.msra.mxu1 %v2826_v46  ;;  %v3230_v46 = vor.u32 %v3558_v40, %v3229_v39  ;;  %v3464_v39 = vld [vmem:[%s5355_s8 + $0x4] sm:$0xf]  ;;  %v2867_v40 = vld [vmem:[%s5355_s8 + $0x1c] sm:$0xf0] }
  0xd7   :  { %1213 = vmatpush.bf16.msra.mxu3 %v2822_v59 }
  0xd9   :  { %1200 = vmatpush.bf16.msra.mxu1 %v2818_v54  ;;  %v3551_v54 = vld [vmem:[%s5355_s8 + $0x2b8] sm:$0xf0] }
  0xdb   :  { %1214 = vmatpush.bf16.msra.mxu3 %v2814_v63  ;;  %v3485_v63 = vld [vmem:[%s5355_s8 + $0xac] sm:$0xf] }
  0xdd   :  { %1201 = vmatpush.bf16.msra.mxu1 %v2810_v62 }
  0xe0   :  { %v777_v0 = vpop.f32.mrf.mxu0 }
  0xe1   :  { %v778_v51 = vadd.f32 %v777_v0, %v765_v4  ;;  %v2801_v0 = vld [vmem:[%s5354_s6] sm:$0xf]  ;;  %v3449_v4 = vld [vmem:[%s5354_s6 + $0x4] sm:$0xf0] }
  0xe3   :  { %v790_v1 = vpop.f32.mrf.mxu1 }
  0xe4   :  { %v791_v43 = vadd.f32 %v790_v1, %v778_v51  ;;  %v3448_v1 = vld [vmem:[%s5354_s6 + $0x4] sm:$0xf]  ;;  %v2803_v51 = vld [vmem:[%s5354_s6 + $0x8] sm:$0xf0] }
  0xe8   :  { %v803_v3 = vpop.f32.mrf.mxu3  ;;  %v779_v30 = vpop.f32.mrf.mxu0 }
  0xe9   :  { %v804_v2 = vadd.f32 %v803_v3, %v791_v43  ;;  %v2802_v3 = vor.u32 %v3449_v4, %v2801_v0  ;;  %v2806_v30 = vor.u32 %v3448_v1, %v2803_v51  ;;  %v3061_v43 = vld [vmem:[%s5355_s8 + $0x188] sm:$0xf]  ;;  %v3202_v4 = vor.u32 %v3551_v54, %v3201_v48  ;;  %v3520_v54 = vld [vmem:[%s5355_s8 + $0x1c4] sm:$0xf] }
  0xea   :  { %v2951_v0 = vld [vmem:[%s5355_s8 + $0xc4] sm:$0xf0]  ;;  %v3206_v1 = vor.u32 %v3548_v55, %v3203_v56  ;;  %v3091_v56 = vld [vmem:[%s5355_s8 + $0x1dc] sm:$0xf0] }
  0xeb   :  { %v816_v37 = vpop.f32.mrf.mxu2  ;;  %v792_v58 = vpop.f32.mrf.mxu1  ;;  %1202 = vmatpush.bf16.msra.mxu1 %v2802_v3  ;;  %1215 = vmatpush.bf16.msra.mxu3 %v2806_v30  ;;  %v3173_v51 = vld [vmem:[%s5355_s8 + $0x268] sm:$0xf]  ;;  %v3544_v3 = vld [vmem:[%s5355_s8 + $0x280] sm:$0xf0] }
  0xec   :  { %v817_v5 = vadd.f32 %v816_v37, %v804_v2  ;;  %v3516_v37 = vld [vmem:[%s5355_s8 + $0x1a0] sm:$0xf0]  ;;  %v3513_v2 = vld [vmem:[%s5355_s8 + $0x18c] sm:$0xf] }
  0xed   :  { %v3062_v58 = vor.u32 %v3516_v37, %v3061_v43  ;;  %v3541_v37 = vld [vmem:[%s5355_s8 + $0x26c] sm:$0xf] }
  0xef   :  { %1945 = vmatpush.bf16.msrb.mxu0 %v3062_v58  ;;  %v2954_v58 = vor.u32 %v3485_v63, %v2951_v0  ;;  %v3041_v0 = vld [vmem:[%s5355_s8 + $0x158] sm:$0xf] }
  0xf0   :  { %v805_v6 = vpop.f32.mrf.mxu3  ;;  %v829_v7 = vpop.f32.mrf.mxu0 }
  0xf1   :  { %v830_v8 = vadd.f32 %v829_v7, %v817_v5  ;;  %v3063_v5 = vld [vmem:[%s5355_s8 + $0x1a4] sm:$0xf0]  ;;  %v3033_v6 = vld [vmem:[%s5355_s8 + $0x150] sm:$0xf]  ;;  %v3509_v7 = vld [vmem:[%s5355_s8 + $0x168] sm:$0xf0] }
  0xf2   :  { %v3034_v12 = vor.u32 %v3509_v7, %v3033_v6  ;;  %v3481_v6 = vld [vmem:[%s5355_s8 + $0x88] sm:$0xf0] }
  0xf3   :  { %v818_v9 = vpop.f32.mrf.mxu2  ;;  %v834_v10 = vmax.f32 %v830_v8, 0.0  ;;  %v869_v8 = vld [vmem:[%s5356_s5] sm:$0x3] }
  0xf4   :  { %v3066_v9 = vor.u32 %v3513_v2, %v3063_v5  ;;  %v871_v28 = vperm.slane %v869_v8, 0  ;;  %v872_v29 = vperm.slane %v869_v8, 1  ;;  %1946 = vmatpush.bf16.msrb.mxu0 %v3034_v12  ;;  %v3175_v2 = vld [vmem:[%s5355_s8 + $0x284] sm:$0xf0]  ;;  %v2921_v5 = vld [vmem:[%s5355_s8 + $0x70] sm:$0xf] }
  0xf5   :  { %v836_v11 = vpack.c.bf16 %v834_v10, %v834_v10  ;;  %v3506_v10 = vld [vmem:[%s5355_s8 + $0x154] sm:$0xf]  ;;  %v2922_v12 = vor.u32 %v3481_v6, %v2921_v5  ;;  %v3563_v6 = vld [vmem:[%s5355_s8 + $0x31c] sm:$0xf] }
  0xf6   :  { %1971 = vmatpush.bf16.msrb.mxu1 %v3066_v9  ;;  %v3478_v8 = vld [vmem:[%s5355_s8 + $0x74] sm:$0xf]  ;;  %v2923_v9 = vld [vmem:[%s5355_s8 + $0x8c] sm:$0xf0] }
  0xf7   :  { %1056 = vmatmul.bf16.vlgmr.msrb.gmra.mxu3 %v836_v11  ;;  %1082 = vmatmul.bf16.vlgmr.msra.gmra.mxu2 %v836_v11  ;;  %v3035_v11 = vld [vmem:[%s5355_s8 + $0x16c] sm:$0xf0] }
  0xf8   :  { %v831_v49 = vpop.f32.mrf.mxu0  ;;  %v3038_v16 = vor.u32 %v3506_v10, %v3035_v11  ;;  %1984 = vmatpush.bf16.msrb.mxu3 %v3290_v18  ;;  %v3174_v10 = vor.u32 %v3544_v3, %v3173_v51  ;;  %v3178_v11 = vor.u32 %v3541_v37, %v3175_v2  ;;  %v2926_v18 = vor.u32 %v3478_v8, %v2923_v9  ;;  %v3507_v51 = vld [vmem:[%s5355_s8 + $0x15c] sm:$0xf]  ;;  %v3043_v3 = vld [vmem:[%s5355_s8 + $0x174] sm:$0xf0]  ;;  %v3013_v9 = vld [vmem:[%s5355_s8 + $0x120] sm:$0xf] }
  0xf9   :  { %v3285_v49 = vld [vmem:[%s5355_s8 + $0x348] sm:$0xf]  ;;  %v3265_v2 = vld [vmem:[%s5355_s8 + $0x318] sm:$0xf]  ;;  %v3046_v8 = vor.u32 %v3507_v51, %v3043_v3  ;;  %v3535_v51 = vld [vmem:[%s5355_s8 + $0x23c] sm:$0xf] }
  0xfa   :  { %v3286_v17 = vor.u32 %v3572_v13, %v3285_v49  ;;  %1972 = vmatpush.bf16.msrb.mxu1 %v3038_v16  ;;  %v3145_v49 = vld [vmem:[%s5355_s8 + $0x230] sm:$0xf]  ;;  %v3537_v13 = vld [vmem:[%s5355_s8 + $0x248] sm:$0xf0]  ;;  %v3155_v3 = vld [vmem:[%s5355_s8 + $0x254] sm:$0xf0] }
  0xfb   :  { %v3146_v24 = vor.u32 %v3537_v13, %v3145_v49  ;;  %v3015_v49 = vld [vmem:[%s5355_s8 + $0x13c] sm:$0xf0] }
  0xfc   :  { %1958 = vmatpush.bf16.msrb.mxu2 %v3286_v17 }
  0xfe   :  { %1973 = vmatpush.bf16.msrb.mxu1 %v3010_v38 }
 0x100   :  { %1959 = vmatpush.bf16.msrb.mxu2 %v3258_v25  ;;  %v3150_v25 = vor.u32 %v3534_v14, %v3147_v15  ;;  %v3237_v14 = vld [vmem:[%s5355_s8 + $0x2e0] sm:$0xf]  ;;  %v3559_v15 = vld [vmem:[%s5355_s8 + $0x2f8] sm:$0xf0] }
 0x104   :  { %1960 = vmatpush.bf16.msrb.mxu2 %v3230_v46  ;;  %v3514_v46 = vld [vmem:[%s5355_s8 + $0x194] sm:$0xf] }
 0x108   :  { %1961 = vmatpush.bf16.msrb.mxu2 %v3202_v4  ;;  %v3510_v4 = vld [vmem:[%s5355_s8 + $0x170] sm:$0xf0] }
 0x109   :  { %v3042_v5 = vor.u32 %v3510_v4, %v3041_v0  ;;  %v3153_v0 = vld [vmem:[%s5355_s8 + $0x238] sm:$0xf]  ;;  %v3538_v4 = vld [vmem:[%s5355_s8 + $0x250] sm:$0xf0] }
 0x10c   :  { %1962 = vmatpush.bf16.msrb.mxu2 %v3174_v10  ;;  %v3503_v10 = vld [vmem:[%s5355_s8 + $0x138] sm:$0xf0] }
 0x110   :  { %1963 = vmatpush.bf16.msrb.mxu2 %v3146_v24  ;;  %v3238_v24 = vor.u32 %v3559_v15, %v3237_v14  ;;  %v3521_v15 = vld [vmem:[%s5355_s8 + $0x1cc] sm:$0xf] }
 0x149   :  { %v4540_v31 = vpop.f32.mrf.mxu1  ;;  %v4542_v32 = vpop.f32.mrf.mxu0 }
 0x14a   :  { %v1045_v50 = vadd.f32 %v4540_v31, %v871_v28  ;;  %v1071_v52 = vadd.f32 %v4542_v32, %v872_v29  ;;  %v2982_v31 = vor.u32 %v3492_v42, %v2979_v44  ;;  %v2949_v32 = vld [vmem:[%s5355_s8 + $0xa8] sm:$0xf]  ;;  %v3530_v28 = vld [vmem:[%s5355_s8 + $0x210] sm:$0xf0]  ;;  %v3527_v29 = vld [vmem:[%s5355_s8 + $0x1fc] sm:$0xf] }
 0x14b   :  { %v2950_v43 = vor.u32 %v3488_v60, %v2949_v32  ;;  %v3517_v44 = vld [vmem:[%s5355_s8 + $0x1a8] sm:$0xf0]  ;;  %v3570_v60 = vld [vmem:[%s5355_s8 + $0x354] sm:$0xf] }
 0x14c   :  { %1974 = vmatpush.bf16.msrb.mxu1 %v2982_v31  ;;  %v2870_v31 = vor.u32 %v3464_v39, %v2867_v40  ;;  %v3070_v32 = vor.u32 %v3517_v44, %v3069_v41  ;;  %v2959_v39 = vld [vmem:[%s5355_s8 + $0xcc] sm:$0xf0] }
 0x150   :  { %1975 = vmatpush.bf16.msrb.mxu1 %v2954_v58  ;;  %v3566_v58 = vld [vmem:[%s5355_s8 + $0x330] sm:$0xf0] }
 0x151   :  { %v1046_v33 = vpop.f32.mrf.mxu1  ;;  %v1072_v34 = vpop.f32.mrf.mxu0 }
 0x152   :  { %v3006_v33 = vor.u32 %v3502_v20, %v3005_v19  ;;  %v3262_v34 = vor.u32 %v3562_v26, %v3259_v27  ;;  %v2893_v19 = vld [vmem:[%s5355_s8 + $0x38] sm:$0xf]  ;;  %v3474_v20 = vld [vmem:[%s5355_s8 + $0x50] sm:$0xf0] }
 0x153   :  { %v3117_v26 = vld [vmem:[%s5355_s8 + $0x1f8] sm:$0xf]  ;;  %v2894_v27 = vor.u32 %v3474_v20, %v2893_v19  ;;  %v2985_v20 = vld [vmem:[%s5355_s8 + $0xe8] sm:$0xf] }
 0x154   :  { %1985 = vmatpush.bf16.msrb.mxu3 %v3262_v34  ;;  %1947 = vmatpush.bf16.msrb.mxu0 %v3006_v33  ;;  %v3119_v33 = vld [vmem:[%s5355_s8 + $0x214] sm:$0xf0]  ;;  %v2898_v34 = vor.u32 %v3471_v21, %v2895_v22  ;;  %v3118_v45 = vor.u32 %v3530_v28, %v3117_v26  ;;  %v3496_v21 = vld [vmem:[%s5355_s8 + $0x100] sm:$0xf0]  ;;  %v3493_v22 = vld [vmem:[%s5355_s8 + $0xec] sm:$0xf] }
 0x155   :  { %1976 = vmatpush.bf16.msrb.mxu1 %v2926_v18  ;;  %v3122_v48 = vor.u32 %v3527_v29, %v3119_v33  ;;  %v3239_v18 = vld [vmem:[%s5355_s8 + $0x2fc] sm:$0xf0]  ;;  %v3209_v26 = vld [vmem:[%s5355_s8 + $0x2a8] sm:$0xf]  ;;  %v2986_v28 = vor.u32 %v3496_v21, %v2985_v20  ;;  %v3549_v29 = vld [vmem:[%s5355_s8 + $0x2ac] sm:$0xf] }
 0x156   :  { %1964 = vmatpush.bf16.msrb.mxu2 %v3118_v45  ;;  %v3211_v33 = vld [vmem:[%s5355_s8 + $0x2c4] sm:$0xf0]  ;;  %v2929_v45 = vld [vmem:[%s5355_s8 + $0x78] sm:$0xf] }
 0x157   :  { %v3214_v41 = vor.u32 %v3549_v29, %v3211_v33  ;;  %v3077_v21 = vld [vmem:[%s5355_s8 + $0x198] sm:$0xf]  ;;  %v3049_v33 = vld [vmem:[%s5355_s8 + $0x160] sm:$0xf] }
 0x158   :  { %1986 = vmatpush.bf16.msrb.mxu3 %v3234_v47  ;;  %1948 = vmatpush.bf16.msrb.mxu0 %v2978_v53  ;;  %v3071_v47 = vld [vmem:[%s5355_s8 + $0x1ac] sm:$0xf0]  ;;  %v3523_v53 = vld [vmem:[%s5355_s8 + $0x1d8] sm:$0xf0] }
 0x159   :  { %1977 = vmatpush.bf16.msrb.mxu1 %v2898_v34  ;;  %v3074_v63 = vor.u32 %v3514_v46, %v3071_v47  ;;  %v3482_v46 = vld [vmem:[%s5355_s8 + $0x90] sm:$0xf0]  ;;  %v3479_v47 = vld [vmem:[%s5355_s8 + $0x7c] sm:$0xf] }
 0x15c   :  { %1987 = vmatpush.bf16.msrb.mxu3 %v3206_v1  ;;  %1949 = vmatpush.bf16.msrb.mxu0 %v2950_v43 }
 0x15d   :  { %1978 = vmatpush.bf16.msrb.mxu1 %v2870_v31  ;;  %v2901_v31 = vld [vmem:[%s5355_s8 + $0x40] sm:$0xf] }
 0x160   :  { %1988 = vmatpush.bf16.msrb.mxu3 %v3178_v11  ;;  %1950 = vmatpush.bf16.msrb.mxu0 %v2922_v12  ;;  %v3500_v11 = vld [vmem:[%s5355_s8 + $0x124] sm:$0xf]  ;;  %v3266_v12 = vor.u32 %v3566_v58, %v3265_v2  ;;  %v3465_v58 = vld [vmem:[%s5355_s8 + $0xc] sm:$0xf] }
 0x161   :  { %v3018_v19 = vor.u32 %v3500_v11, %v3015_v49  ;;  %v3127_v11 = vld [vmem:[%s5355_s8 + $0x21c] sm:$0xf0] }
 0x164   :  { %1989 = vmatpush.bf16.msrb.mxu3 %v3150_v25  ;;  %1951 = vmatpush.bf16.msrb.mxu0 %v2894_v27  ;;  %v3552_v27 = vld [vmem:[%s5355_s8 + $0x2c0] sm:$0xf0] }
 0x165   :  { %v3210_v40 = vor.u32 %v3552_v27, %v3209_v26 }
 0x168   :  { %1990 = vmatpush.bf16.msrb.mxu3 %v3122_v48  ;;  %v2931_v48 = vld [vmem:[%s5355_s8 + $0x94] sm:$0xf0] }
 0x17a   :  { %v1057_v57 = vpop.f32.mrf.mxu3  ;;  %v1083_v59 = vpop.f32.mrf.mxu2 }
 0x17b   :  { %v4711_v61 = vadd.f32 %v1057_v57, %v1045_v50  ;;  %v1084_v62 = vadd.f32 %v1083_v59, %v1071_v52  ;;  %v2866_v50 = vor.u32 %v3467_v36, %v2865_v35  ;;  %v3089_v52 = vld [vmem:[%s5355_s8 + $0x1c0] sm:$0xf]  ;;  %v3293_v57 = vld [vmem:[%s5355_s8 + $0x350] sm:$0xf]  ;;  %v3573_v59 = vld [vmem:[%s5355_s8 + $0x368] sm:$0xf0] }
 0x17c   :  { %v3090_v1 = vor.u32 %v3523_v53, %v3089_v52  ;;  %v3294_v43 = vor.u32 %v3573_v59, %v3293_v57  ;;  %v2957_v35 = vld [vmem:[%s5355_s8 + $0xb0] sm:$0xf]  ;;  %v3489_v36 = vld [vmem:[%s5355_s8 + $0xc8] sm:$0xf0]  ;;  %v2934_v52 = vor.u32 %v3479_v47, %v2931_v48 }
 0x17d   :  { %2267 = vst [vmem:[%s5357_s11] sm:$0xff] %v4711_v61  ;;  %v1087_v30 = vmul.f32 0.5, %v1084_v62  ;;  %1952 = vmatpush.bf16.msrb.mxu0 %v2866_v50  ;;  %v2930_v50 = vor.u32 %v3482_v46, %v2929_v45  ;;  %v3181_v53 = vld [vmem:[%s5355_s8 + $0x270] sm:$0xf]  ;;  %v3303_v45 = vld [vmem:[%s5355_s8 + $0x374] sm:$0xf0] }
 0x17e   :  { %2268 = vst [vmem:[%s5357_s11 + $0x8] sm:$0xff] %v1084_v62  ;;  %1965 = vmatpush.bf16.msrb.mxu2 %v3090_v1  ;;  %v3183_v57 = vld [vmem:[%s5355_s8 + $0x28c] sm:$0xf0]  ;;  %v3154_v1 = vor.u32 %v3538_v4, %v3153_v0  ;;  %v3497_v4 = vld [vmem:[%s5355_s8 + $0x108] sm:$0xf0] }
 0x17f   :  { %v1088_v7 = vmul.f32 1.442695, %v1087_v30  ;;  %v3094_v30 = vor.u32 %v3520_v54, %v3091_v56  ;;  %v3545_v54 = vld [vmem:[%s5355_s8 + $0x288] sm:$0xf0]  ;;  %v3542_v56 = vld [vmem:[%s5355_s8 + $0x274] sm:$0xf] }
 0x180   :  { %v3186_v59 = vor.u32 %v3542_v56, %v3183_v57  ;;  %v2993_v0 = vld [vmem:[%s5355_s8 + $0xf0] sm:$0xf] }
 0x181   :  { %3576 = vpow2.f32 %v1088_v7  ;;  %1997 = vmatpush.bf16.msra.mxu0 %v3070_v32  ;;  %v3267_v7 = vld [vmem:[%s5355_s8 + $0x334] sm:$0xf0]  ;;  %1991 = vmatpush.bf16.msrb.mxu3 %v3094_v30  ;;  %v3475_v32 = vld [vmem:[%s5355_s8 + $0x58] sm:$0xf0]  ;;  %v3158_v30 = vor.u32 %v3535_v51, %v3155_v3  ;;  %v2995_v51 = vld [vmem:[%s5355_s8 + $0x10c] sm:$0xf0] }
 0x182   :  { %v1059_v16 = vpop.f32.mrf.mxu3  ;;  %v1085_v17 = vpop.f32.mrf.mxu2  ;;  %2010 = vmatpush.bf16.msra.mxu2 %v3294_v43  ;;  %v3270_v13 = vor.u32 %v3563_v6, %v3267_v7  ;;  %v2873_v43 = vld [vmem:[%s5355_s8 + $0x8] sm:$0xf]  ;;  %v3125_v7 = vld [vmem:[%s5355_s8 + $0x200] sm:$0xf] }
 0x183   :  { %v3014_v16 = vor.u32 %v3503_v10, %v3013_v9  ;;  %v3556_v17 = vld [vmem:[%s5355_s8 + $0x2e4] sm:$0xf] }
 0x184   :  { %v3242_v25 = vor.u32 %v3556_v17, %v3239_v18  ;;  %v3528_v10 = vld [vmem:[%s5355_s8 + $0x204] sm:$0xf]  ;;  %v1109_v18 = vld [vmem:[%s5359_s7] sm:$0x3] }
 0x185   :  { %1998 = vmatpush.bf16.msra.mxu0 %v3042_v5  ;;  %v2875_v5 = vld [vmem:[%s5355_s8 + $0x24] sm:$0xf0]  ;;  %v3130_v49 = vor.u32 %v3528_v10, %v3127_v11  ;;  %v1112_v27 = vperm.slane %v1109_v18, 1  ;;  %v3487_v10 = vld [vmem:[%s5355_s8 + $0xbc] sm:$0xf] }
 0x186   :  { %2011 = vmatpush.bf16.msra.mxu2 %v3266_v12  ;;  %v2878_v6 = vor.u32 %v3465_v58, %v2875_v5  ;;  %v3097_v12 = vld [vmem:[%s5355_s8 + $0x1c8] sm:$0xf]  ;;  %v3557_v58 = vld [vmem:[%s5355_s8 + $0x2ec] sm:$0xf]  ;;  %v2967_v11 = vld [vmem:[%s5355_s8 + $0xd4] sm:$0xf0] }
 0x187   :  { %v3577_v38 = vpop.eup %3576  ;;  %v3247_v5 = vld [vmem:[%s5355_s8 + $0x304] sm:$0xf0] }
 0x188   :  { %v1090_v42 = vmul.f32 %v3577_v38, %v45_v23  ;;  %v2987_v23 = vld [vmem:[%s5355_s8 + $0x104] sm:$0xf0]  ;;  %v3486_v38 = vld [vmem:[%s5355_s8 + $0xb4] sm:$0xf] }
 0x189   :  { %1999 = vmatpush.bf16.msra.mxu0 %v3014_v16  ;;  %v2990_v34 = vor.u32 %v3493_v22, %v2987_v23  ;;  %v2962_v44 = vor.u32 %v3486_v38, %v2959_v39  ;;  %v3099_v16 = vld [vmem:[%s5355_s8 + $0x1e4] sm:$0xf0]  ;;  %v3518_v23 = vld [vmem:[%s5355_s8 + $0x1b0] sm:$0xf0]  ;;  %v3051_v38 = vld [vmem:[%s5355_s8 + $0x17c] sm:$0xf0] }
 0x18a   :  { %v1091_v55 = vadd.f32 %v1090_v42, %v4711_v61  ;;  %v3295_v61 = vld [vmem:[%s5355_s8 + $0x36c] sm:$0xf0]  ;;  %2012 = vmatpush.bf16.msra.mxu2 %v3238_v24  ;;  %v2958_v42 = vor.u32 %v3489_v36, %v2957_v35  ;;  %v3102_v17 = vor.u32 %v3521_v15, %v3099_v16  ;;  %v3515_v24 = vld [vmem:[%s5355_s8 + $0x19c] sm:$0xf]  ;;  %v3508_v36 = vld [vmem:[%s5355_s8 + $0x164] sm:$0xf] }
 0x18b   :  { %v3298_v37 = vor.u32 %v3570_v60, %v3295_v61  ;;  %v2902_v60 = vor.u32 %v3475_v32, %v2901_v31  ;;  %v3472_v61 = vld [vmem:[%s5355_s8 + $0x44] sm:$0xf]  ;;  %v3511_v35 = vld [vmem:[%s5355_s8 + $0x178] sm:$0xf0]  ;;  %v3054_v48 = vor.u32 %v3508_v36, %v3051_v38  ;;  %v3550_v15 = vld [vmem:[%s5355_s8 + $0x2b4] sm:$0xf] }
 0x18c   :  { %v1092_v62 = vpack.c.bf16 %v1091_v55, %v1091_v55  ;;  %v3182_v55 = vor.u32 %v3545_v54, %v3181_v53  ;;  %v3050_v47 = vor.u32 %v3511_v35, %v3049_v33  ;;  %v3501_v54 = vld [vmem:[%s5355_s8 + $0x12c] sm:$0xf]  ;;  %v3567_v32 = vld [vmem:[%s5355_s8 + $0x338] sm:$0xf0]  ;;  %v3219_v16 = vld [vmem:[%s5355_s8 + $0x2cc] sm:$0xf0] }
 0x18d   :  { %2000 = vmatpush.bf16.msra.mxu0 %v2986_v28  ;;  %v3078_v28 = vor.u32 %v3518_v23, %v3077_v21  ;;  %v3480_v21 = vld [vmem:[%s5355_s8 + $0x84] sm:$0xf]  ;;  %v2909_v35 = vld [vmem:[%s5355_s8 + $0x48] sm:$0xf]  ;;  %v3473_v38 = vld [vmem:[%s5355_s8 + $0x4c] sm:$0xf] }
 0x18e   :  { %1203 = vmatmul.bf16.vlgmr.msra.gmra.mxu1 %v1092_v62  ;;  %1216 = vmatmul.bf16.vlgmr.msra.gmra.mxu3 %v1092_v62  ;;  %v2903_v62 = vld [vmem:[%s5355_s8 + $0x5c] sm:$0xf0]  ;;  %v3476_v36 = vld [vmem:[%s5355_s8 + $0x60] sm:$0xf0] }
 0x18f   :  { %2023 = vmatpush.bf16.msra.mxu1 %v3074_v63  ;;  %2036 = vmatpush.bf16.msra.mxu3 %v3298_v37  ;;  %v2906_v63 = vor.u32 %v3472_v61, %v2903_v62  ;;  %v3468_v37 = vld [vmem:[%s5355_s8 + $0x20] sm:$0xf0]  ;;  %v3275_v61 = vld [vmem:[%s5355_s8 + $0x33c] sm:$0xf0] }
 0x190   :  { %2013 = vmatpush.bf16.msra.mxu2 %v3210_v40  ;;  %v2874_v2 = vor.u32 %v3468_v37, %v2873_v43  ;;  %v3301_v40 = vld [vmem:[%s5355_s8 + $0x358] sm:$0xf]  ;;  %v3245_v37 = vld [vmem:[%s5355_s8 + $0x2e8] sm:$0xf] }
 0x191   :  { %2001 = vmatpush.bf16.msra.mxu0 %v2958_v42  ;;  %v3574_v42 = vld [vmem:[%s5355_s8 + $0x370] sm:$0xf0] }
 0x192   :  { %v3302_v56 = vor.u32 %v3574_v42, %v3301_v40  ;;  %v3161_v42 = vld [vmem:[%s5355_s8 + $0x240] sm:$0xf] }
 0x193   :  { %2024 = vmatpush.bf16.msra.mxu1 %v3046_v8  ;;  %2037 = vmatpush.bf16.msra.mxu3 %v3270_v13  ;;  %v3531_v8 = vld [vmem:[%s5355_s8 + $0x218] sm:$0xf0]  ;;  %v3524_v13 = vld [vmem:[%s5355_s8 + $0x1e0] sm:$0xf0] }
 0x194   :  { %2014 = vmatpush.bf16.msra.mxu2 %v3182_v55  ;;  %v3126_v9 = vor.u32 %v3531_v8, %v3125_v7  ;;  %v3098_v14 = vor.u32 %v3524_v13, %v3097_v12  ;;  %v3023_v55 = vld [vmem:[%s5355_s8 + $0x144] sm:$0xf0]  ;;  %v2965_v8 = vld [vmem:[%s5355_s8 + $0xb8] sm:$0xf]  ;;  %v3250_v12 = vor.u32 %v3557_v58, %v3247_v5  ;;  %v3217_v13 = vld [vmem:[%s5355_s8 + $0x2b0] sm:$0xf] }
 0x195   :  { %2002 = vmatpush.bf16.msra.mxu0 %v2930_v50  ;;  %v3021_v50 = vld [vmem:[%s5355_s8 + $0x128] sm:$0xf]  ;;  %v3107_v58 = vld [vmem:[%s5355_s8 + $0x1ec] sm:$0xf0]  ;;  %v3309_v5 = vld [vmem:[%s5355_s8 + $0x360] sm:$0xf] }
 0x197   :  { %2025 = vmatpush.bf16.msra.mxu1 %v3018_v19  ;;  %2038 = vmatpush.bf16.msra.mxu3 %v3242_v25  ;;  %v1111_v19 = vperm.slane %v1109_v18, 0  ;;  %v3079_v25 = vld [vmem:[%s5355_s8 + $0x1b4] sm:$0xf0]  ;;  %v2970_v18 = vor.u32 %v3487_v10, %v2967_v11  ;;  %v3029_v10 = vld [vmem:[%s5355_s8 + $0x130] sm:$0xf] }
 0x198   :  { %2015 = vmatpush.bf16.msra.mxu2 %v3154_v1  ;;  %v3082_v29 = vor.u32 %v3515_v24, %v3079_v25  ;;  %v3494_v1 = vld [vmem:[%s5355_s8 + $0xf4] sm:$0xf]  ;;  %v3222_v24 = vor.u32 %v3550_v15, %v3219_v16  ;;  %v3189_v25 = vld [vmem:[%s5355_s8 + $0x278] sm:$0xf]  ;;  %v3505_v11 = vld [vmem:[%s5355_s8 + $0x148] sm:$0xf0] }
 0x199   :  { %2003 = vmatpush.bf16.msra.mxu0 %v2902_v60  ;;  %v3564_v60 = vld [vmem:[%s5355_s8 + $0x324] sm:$0xf]  ;;  %v2998_v7 = vor.u32 %v3494_v1, %v2995_v51  ;;  %v3001_v15 = vld [vmem:[%s5355_s8 + $0xf8] sm:$0xf]  ;;  %v3498_v16 = vld [vmem:[%s5355_s8 + $0x110] sm:$0xf0] }
 0x19a   :  { %v3278_v43 = vor.u32 %v3564_v60, %v3275_v61  ;;  %v3532_v60 = vld [vmem:[%s5355_s8 + $0x220] sm:$0xf0]  ;;  %v3529_v61 = vld [vmem:[%s5355_s8 + $0x20c] sm:$0xf] }
 0x19b   :  { %2026 = vmatpush.bf16.msra.mxu1 %v2990_v34  ;;  %2039 = vmatpush.bf16.msra.mxu3 %v3214_v41 }
 0x19c   :  { %2016 = vmatpush.bf16.msra.mxu2 %v3126_v9  ;;  %v3490_v9 = vld [vmem:[%s5355_s8 + $0xd0] sm:$0xf0] }
 0x19d   :  { %2004 = vmatpush.bf16.msra.mxu0 %v2874_v2  ;;  %v3560_v2 = vld [vmem:[%s5355_s8 + $0x300] sm:$0xf0] }
 0x19f   :  { %2027 = vmatpush.bf16.msra.mxu1 %v2962_v44  ;;  %2040 = vmatpush.bf16.msra.mxu3 %v3186_v59  ;;  %v3571_v44 = vld [vmem:[%s5355_s8 + $0x35c] sm:$0xf]  ;;  %v3273_v59 = vld [vmem:[%s5355_s8 + $0x320] sm:$0xf] }
 0x1a0   :  { %2017 = vmatpush.bf16.msra.mxu2 %v3098_v14  ;;  %v3306_v57 = vor.u32 %v3571_v44, %v3303_v45  ;;  %v3553_v14 = vld [vmem:[%s5355_s8 + $0x2c8] sm:$0xf0]  ;;  %v3539_v44 = vld [vmem:[%s5355_s8 + $0x258] sm:$0xf0]  ;;  %v3536_v45 = vld [vmem:[%s5355_s8 + $0x244] sm:$0xf] }
 0x1a1   :  { %v3218_v23 = vor.u32 %v3553_v14, %v3217_v13  ;;  %v3568_v13 = vld [vmem:[%s5355_s8 + $0x340] sm:$0xf0]  ;;  %v3030_v14 = vor.u32 %v3505_v11, %v3029_v10 }
 0x1a3   :  { %2028 = vmatpush.bf16.msra.mxu1 %v2934_v52  ;;  %2041 = vmatpush.bf16.msra.mxu3 %v3158_v30  ;;  %v3504_v52 = vld [vmem:[%s5355_s8 + $0x140] sm:$0xf0]  ;;  %v3274_v30 = vor.u32 %v3567_v32, %v3273_v59  ;;  %v3519_v59 = vld [vmem:[%s5355_s8 + $0x1b8] sm:$0xf0]  ;;  %v3133_v32 = vld [vmem:[%s5355_s8 + $0x208] sm:$0xf] }
 0x1a4   :  { %v3022_v62 = vor.u32 %v3504_v52, %v3021_v50  ;;  %v2881_v50 = vld [vmem:[%s5355_s8 + $0x10] sm:$0xf]  ;;  %v3469_v52 = vld [vmem:[%s5355_s8 + $0x28] sm:$0xf0]  ;;  %v3134_v1 = vor.u32 %v3532_v60, %v3133_v32  ;;  %v5318_v32 = vld [vmem:[%s5360_s9] sm:$0x7f] }
 0x1a5   :  { %v1355_v60 = vperm.slane %v5318_v32, 0 }
 0x1a7   :  { %2029 = vmatpush.bf16.msra.mxu1 %v2906_v63  ;;  %2042 = vmatpush.bf16.msra.mxu3 %v3130_v49  ;;  %v3026_v63 = vor.u32 %v3501_v54, %v3023_v55  ;;  %v3246_v49 = vor.u32 %v3560_v2, %v3245_v37  ;;  %v2883_v54 = vld [vmem:[%s5355_s8 + $0x2c] sm:$0xf0]  ;;  %v3162_v55 = vor.u32 %v3539_v44, %v3161_v42  ;;  %v3525_v37 = vld [vmem:[%s5355_s8 + $0x1e8] sm:$0xf0]  ;;  %v3522_v2 = vld [vmem:[%s5355_s8 + $0x1d4] sm:$0xf] }
 0x1a8   :  { %v3540_v42 = vld [vmem:[%s5355_s8 + $0x260] sm:$0xf0] }
 0x1ab   :  { %2030 = vmatpush.bf16.msra.mxu1 %v2878_v6  ;;  %2043 = vmatpush.bf16.msra.mxu3 %v3102_v17  ;;  %v2994_v6 = vor.u32 %v3497_v4, %v2993_v0  ;;  %v2966_v17 = vor.u32 %v3490_v9, %v2965_v8  ;;  %v3110_v9 = vor.u32 %v3522_v2, %v3107_v58 }
 0x20b   :  { %v1204_v20 = vpop.f32.mrf.mxu1 }
 0x20c   :  { %v1205_v22 = vadd.f32 %v1204_v20, %v1111_v19  ;;  %v2937_v19 = vld [vmem:[%s5355_s8 + $0x80] sm:$0xf]  ;;  %v3483_v20 = vld [vmem:[%s5355_s8 + $0x98] sm:$0xf0] }
 0x20e   :  { %v1221_v26 = vmax.f32 %v1205_v22, 0.0  ;;  %v2939_v22 = vld [vmem:[%s5355_s8 + $0x9c] sm:$0xf0] }
 0x20f   :  { %v2942_v33 = vor.u32 %v3480_v21, %v2939_v22  ;;  %v2973_v21 = vld [vmem:[%s5355_s8 + $0xc0] sm:$0xf]  ;;  %v3491_v22 = vld [vmem:[%s5355_s8 + $0xd8] sm:$0xf0] }
 0x210   :  { %v5024_v34 = vpack.c.bf16 %v1221_v26, %v1221_v26  ;;  %v3546_v26 = vld [vmem:[%s5355_s8 + $0x290] sm:$0xf0] }
 0x211   :  { %v1217_v39 = vpop.f32.mrf.mxu3  ;;  %v3190_v40 = vor.u32 %v3546_v26, %v3189_v25  ;;  %v3554_v25 = vld [vmem:[%s5355_s8 + $0x2d0] sm:$0xf0]  ;;  %v2974_v26 = vor.u32 %v3491_v22, %v2973_v21 }
 0x212   :  { %v1218_v41 = vadd.f32 %v1217_v39, %v1112_v27  ;;  %1953 = vmatmul.bf16.vlgmr.msrb.gmra.mxu0 %v5024_v34  ;;  %1979 = vmatmul.bf16.vlgmr.msrb.gmra.mxu1 %v5024_v34  ;;  %v3543_v27 = vld [vmem:[%s5355_s8 + $0x27c] sm:$0xf]  ;;  %v2911_v39 = vld [vmem:[%s5355_s8 + $0x64] sm:$0xf0] }
 0x213   :  { %2049 = vmatpush.bf16.msrb.mxu0 %v3078_v28  ;;  %v1206_v46 = vpop.f32.mrf.mxu1  ;;  %2075 = vmatpush.bf16.msrb.mxu1 %v3082_v29  ;;  %v3191_v28 = vld [vmem:[%s5355_s8 + $0x294] sm:$0xf0]  ;;  %v2938_v29 = vor.u32 %v3483_v20, %v2937_v19  ;;  %v3561_v19 = vld [vmem:[%s5355_s8 + $0x308] sm:$0xf0]  ;;  %v3002_v20 = vor.u32 %v3498_v16, %v3001_v15 }
 0x214   :  { %v1222_v53 = vmax.f32 %v1218_v41, 0.0  ;;  %v3194_v41 = vor.u32 %v3543_v27, %v3191_v28  ;;  %v3163_v46 = vld [vmem:[%s5355_s8 + $0x25c] sm:$0xf0]  ;;  %v2945_v27 = vld [vmem:[%s5355_s8 + $0x88] sm:$0xf] }
 0x215   :  { %v3484_v28 = vld [vmem:[%s5355_s8 + $0xa0] sm:$0xf0] }
 0x216   :  { %v5064_v31 = vpack.c.bf16 %v1222_v53, %v1222_v53  ;;  %v3466_v53 = vld [vmem:[%s5355_s8 + $0x14] sm:$0xf] }
 0x217   :  { %2050 = vmatpush.bf16.msrb.mxu0 %v3050_v47  ;;  %2076 = vmatpush.bf16.msrb.mxu1 %v3054_v48  ;;  %v2910_v47 = vor.u32 %v3476_v36, %v2909_v35  ;;  %v2914_v48 = vor.u32 %v3473_v38, %v2911_v39  ;;  %v2886_v0 = vor.u32 %v3466_v53, %v2883_v54  ;;  %v3547_v35 = vld [vmem:[%s5355_s8 + $0x298] sm:$0xf0]  ;;  %v2917_v38 = vld [vmem:[%s5355_s8 + $0x50] sm:$0xf]  ;;  %v3477_v39 = vld [vmem:[%s5355_s8 + $0x68] sm:$0xf0] }
 0x218   :  { %1966 = vmatmul.bf16.vlgmr.msrb.gmra.mxu2 %v5064_v31  ;;  %1992 = vmatmul.bf16.vlgmr.msrb.gmra.mxu3 %v5064_v31  ;;  %v2946_v36 = vor.u32 %v3484_v28, %v2945_v27  ;;  %v2918_v44 = vor.u32 %v3477_v39, %v2917_v38  ;;  %v3113_v54 = vld [vmem:[%s5355_s8 + $0x1d8] sm:$0xf] }
 0x219   :  { %2062 = vmatpush.bf16.msrb.mxu2 %v3302_v56  ;;  %v1219_v3 = vpop.f32.mrf.mxu3  ;;  %2088 = vmatpush.bf16.msrb.mxu3 %v3306_v57  ;;  %v3166_v56 = vor.u32 %v3536_v45, %v3163_v46  ;;  %v3085_v57 = vld [vmem:[%s5355_s8 + $0x1a0] sm:$0xf]  ;;  %v2889_v45 = vld [vmem:[%s5355_s8 + $0x18] sm:$0xf]  ;;  %v3470_v46 = vld [vmem:[%s5355_s8 + $0x30] sm:$0xf0] }
 0x21a   :  { %v3086_v4 = vor.u32 %v3519_v59, %v3085_v57  ;;  %v3057_v3 = vld [vmem:[%s5355_s8 + $0x168] sm:$0xf] }
 0x21b   :  { %2051 = vmatpush.bf16.msrb.mxu0 %v3022_v62  ;;  %2077 = vmatpush.bf16.msrb.mxu1 %v3026_v63  ;;  %v3135_v62 = vld [vmem:[%s5355_s8 + $0x224] sm:$0xf0]  ;;  %v2882_v63 = vor.u32 %v3469_v52, %v2881_v50  ;;  %v3533_v50 = vld [vmem:[%s5355_s8 + $0x228] sm:$0xf0]  ;;  %v2890_v52 = vor.u32 %v3470_v46, %v2889_v45  ;;  %v1360_v45 = vperm.slane %v5318_v32, 5 }
 0x21c   :  { %v3138_v51 = vor.u32 %v3529_v61, %v3135_v62  ;;  %v1356_v61 = vperm.slane %v5318_v32, 1 }
 0x21d   :  { %2063 = vmatpush.bf16.msrb.mxu2 %v3274_v30  ;;  %2089 = vmatpush.bf16.msrb.mxu3 %v3278_v43  ;;  %v3512_v30 = vld [vmem:[%s5355_s8 + $0x180] sm:$0xf0]  ;;  %v3105_v43 = vld [vmem:[%s5355_s8 + $0x1d0] sm:$0xf] }
 0x21e   :  { %v3106_v8 = vor.u32 %v3525_v37, %v3105_v43 }
 0x21f   :  { %2052 = vmatpush.bf16.msrb.mxu0 %v2994_v6  ;;  %2078 = vmatpush.bf16.msrb.mxu1 %v2998_v7  ;;  %v3575_v6 = vld [vmem:[%s5355_s8 + $0x378] sm:$0xf0]  ;;  %v3058_v7 = vor.u32 %v3512_v30, %v3057_v3 }
 0x221   :  { %2064 = vmatpush.bf16.msrb.mxu2 %v3246_v49  ;;  %2090 = vmatpush.bf16.msrb.mxu3 %v3250_v12  ;;  %v3310_v49 = vor.u32 %v3575_v6, %v3309_v5  ;;  %v3281_v12 = vld [vmem:[%s5355_s8 + $0x328] sm:$0xf]  ;;  %v1357_v6 = vperm.slane %v5318_v32, 2 }
 0x222   :  { %2005 = vmatmul.bf16.vlgmr.msra.gmra.mxu0 %v5024_v34  ;;  %2031 = vmatmul.bf16.vlgmr.msra.gmra.mxu1 %v5024_v34 }
 0x223   :  { %2053 = vmatpush.bf16.msrb.mxu0 %v2966_v17  ;;  %2079 = vmatpush.bf16.msrb.mxu1 %v2970_v18  ;;  %v3282_v17 = vor.u32 %v3568_v13, %v3281_v12  ;;  %v3253_v18 = vld [vmem:[%s5355_s8 + $0x2f0] sm:$0xf] }
 0x225   :  { %2065 = vmatpush.bf16.msrb.mxu2 %v3218_v23  ;;  %2091 = vmatpush.bf16.msrb.mxu3 %v3222_v24  ;;  %v3254_v23 = vor.u32 %v3561_v19, %v3253_v18  ;;  %v3225_v24 = vld [vmem:[%s5355_s8 + $0x2b8] sm:$0xf] }
 0x227   :  { %2054 = vmatpush.bf16.msrb.mxu0 %v2938_v29  ;;  %2080 = vmatpush.bf16.msrb.mxu1 %v2942_v33  ;;  %v3226_v29 = vor.u32 %v3554_v25, %v3225_v24  ;;  %v3197_v33 = vld [vmem:[%s5355_s8 + $0x280] sm:$0xf] }
 0x228   :  { %2018 = vmatmul.bf16.vlgmr.msra.gmra.mxu2 %v5064_v31  ;;  %2044 = vmatmul.bf16.vlgmr.msra.gmra.mxu3 %v5064_v31 }
 0x229   :  { %2066 = vmatpush.bf16.msrb.mxu2 %v3190_v40  ;;  %2092 = vmatpush.bf16.msrb.mxu3 %v3194_v41  ;;  %v3198_v40 = vor.u32 %v3547_v35, %v3197_v33  ;;  %v3169_v41 = vld [vmem:[%s5355_s8 + $0x248] sm:$0xf] }
 0x22b   :  { %2055 = vmatpush.bf16.msrb.mxu0 %v2910_v47  ;;  %2081 = vmatpush.bf16.msrb.mxu1 %v2914_v48  ;;  %v3170_v47 = vor.u32 %v3540_v42, %v3169_v41  ;;  %v3141_v48 = vld [vmem:[%s5355_s8 + $0x210] sm:$0xf] }
 0x22c   :  { %v3142_v53 = vor.u32 %v3533_v50, %v3141_v48 }
 0x22d   :  { %2067 = vmatpush.bf16.msrb.mxu2 %v3162_v55  ;;  %2093 = vmatpush.bf16.msrb.mxu3 %v3166_v56  ;;  %v3526_v55 = vld [vmem:[%s5355_s8 + $0x1f0] sm:$0xf0] }
 0x22e   :  { %v3114_v56 = vor.u32 %v3526_v55, %v3113_v54 }
 0x22f   :  { %2056 = vmatpush.bf16.msrb.mxu0 %v2882_v63  ;;  %2082 = vmatpush.bf16.msrb.mxu1 %v2886_v0 }
 0x231   :  { %2068 = vmatpush.bf16.msrb.mxu2 %v3134_v1  ;;  %2094 = vmatpush.bf16.msrb.mxu3 %v3138_v51 }
 0x232   :  { %2057 = vmatmul.bf16.vlgmr.msrb.gmra.mxu0 %v5024_v34  ;;  %2083 = vmatmul.bf16.vlgmr.msrb.gmra.mxu1 %v5024_v34 }
 0x233   :  { %2101 = vmatpush.bf16.msra.mxu0 %v3086_v4 }
 0x235   :  { %2069 = vmatpush.bf16.msrb.mxu2 %v3106_v8  ;;  %2095 = vmatpush.bf16.msrb.mxu3 %v3110_v9 }
 0x237   :  { %2102 = vmatpush.bf16.msra.mxu0 %v3058_v7  ;;  %v1358_v7 = vperm.slane %v5318_v32, 3 }
 0x238   :  { %2070 = vmatmul.bf16.vlgmr.msrb.gmra.mxu2 %v5064_v31  ;;  %2096 = vmatmul.bf16.vlgmr.msrb.gmra.mxu3 %v5064_v31 }
 0x239   :  { %2114 = vmatpush.bf16.msra.mxu2 %v3310_v49 }
 0x23b   :  { %2103 = vmatpush.bf16.msra.mxu0 %v3030_v14 }
 0x23d   :  { %2115 = vmatpush.bf16.msra.mxu2 %v3282_v17 }
 0x23f   :  { %2104 = vmatpush.bf16.msra.mxu0 %v3002_v20 }
 0x241   :  { %2116 = vmatpush.bf16.msra.mxu2 %v3254_v23 }
 0x243   :  { %2105 = vmatpush.bf16.msra.mxu0 %v2974_v26 }
 0x245   :  { %2117 = vmatpush.bf16.msra.mxu2 %v3226_v29 }
 0x247   :  { %2106 = vmatpush.bf16.msra.mxu0 %v2946_v36 }
 0x249   :  { %2118 = vmatpush.bf16.msra.mxu2 %v3198_v40 }
 0x24b   :  { %2107 = vmatpush.bf16.msra.mxu0 %v2918_v44  ;;  %v1359_v44 = vperm.slane %v5318_v32, 4 }
 0x24d   :  { %2119 = vmatpush.bf16.msra.mxu2 %v3170_v47 }
 0x24f   :  { %2108 = vmatpush.bf16.msra.mxu0 %v2890_v52 }
 0x251   :  { %2120 = vmatpush.bf16.msra.mxu2 %v3142_v53 }
 0x252   :  { %2109 = vmatmul.bf16.vlgmr.msra.gmra.mxu0 %v5024_v34 }
 0x255   :  { %2121 = vmatpush.bf16.msra.mxu2 %v3114_v56 }
 0x258   :  { %2122 = vmatmul.bf16.vlgmr.msra.gmra.mxu2 %v5064_v31 }
 0x28f   :  { %v1954_v57 = vpop.f32.mrf.mxu0  ;;  %v1980_v59 = vpop.f32.mrf.mxu1 }
 0x290   :  { %v1955_v0 = vadd.f32 %v1954_v57, %v1355_v60  ;;  %v1981_v4 = vadd.f32 %v1980_v59, %v1356_v61 }
 0x297   :  { %v1956_v62 = vpop.f32.mrf.mxu0  ;;  %v1982_v63 = vpop.f32.mrf.mxu1 }
 0x29b   :  { %v1967_v1 = vpop.f32.mrf.mxu2  ;;  %v1993_v34 = vpop.f32.mrf.mxu3 }
 0x29c   :  { %v1968_v51 = vadd.f32 %v1967_v1, %v1955_v0  ;;  %v1994_v3 = vadd.f32 %v1993_v34, %v1981_v4 }
 0x29e   :  { %v3311_v31 = vmul.f32 -1.442695, %v1968_v51  ;;  %v3312_v30 = vmul.f32 -1.442695, %v1994_v3 }
 0x29f   :  { %v2006_v43 = vpop.f32.mrf.mxu0  ;;  %v2032_v37 = vpop.f32.mrf.mxu1 }
 0x2a0   :  { %3578 = vpow2.f32 %v3311_v31  ;;  %v2007_v12 = vadd.f32 %v2006_v43, %v1357_v6  ;;  %v2033_v13 = vadd.f32 %v2032_v37, %v1358_v7 }
 0x2a1   :  { %3580 = vpow2.f32 %v3312_v30 }
 0x2a3   :  { %v1969_v2 = vpop.f32.mrf.mxu2  ;;  %v1995_v58 = vpop.f32.mrf.mxu3 }
 0x2a6   :  { %v3579_v5 = vpop.eup %3578 }
 0x2a7   :  { %v3581_v8 = vpop.eup %3580  ;;  %v2148_v9 = vadd.f32 1.0, %v3579_v5  ;;  %v2008_v10 = vpop.f32.mrf.mxu0 }
 0x2a8   :  { %v2034_v11 = vpop.f32.mrf.mxu1  ;;  %v2149_v49 = vadd.f32 1.0, %v3581_v8 }
 0x2a9   :  { %3582 = vrcp.f32 %v2148_v9  ;;  %v2166_v27 = vand.u32 2147483648, %v2148_v9  ;;  %v2164_v36 = vand.u32 2147483647, %v2148_v9  ;;  %vm2160_vm3 = vweird.f32 %v2148_v9 }
 0x2aa   :  { %3584 = vrcp.f32 %v2149_v49  ;;  %v2181_v38 = vand.u32 2147483648, %v2149_v49  ;;  %v2179_v40 = vand.u32 2147483647, %v2149_v49  ;;  %vm2175_vm5 = vweird.f32 %v2149_v49 }
 0x2ab   :  { %v2019_v14 = vpop.f32.mrf.mxu2  ;;  %v2045_v15 = vpop.f32.mrf.mxu3  ;;  %v2167_v47 = vor.u32 1.1754944e-38, %v2166_v27  ;;  %vm2165_vm6 = vcmp.eq.f32.partialorder %v2164_v36, 8.507059e+37 }
 0x2ac   :  { %v2020_v16 = vadd.f32 %v2019_v14, %v2007_v12  ;;  %v2046_v17 = vadd.f32 %v2045_v15, %v2033_v13  ;;  %v2182_v55 = vor.u32 1.1754944e-38, %v2181_v38  ;;  %vm2180_vm8 = vcmp.eq.f32.partialorder %v2179_v40, 8.507059e+37 }
 0x2ae   :  { %v3313_v18 = vmul.f32 -1.442695, %v2020_v16  ;;  %v3314_v19 = vmul.f32 -1.442695, %v2046_v17 }
 0x2af   :  { %v3583_v20 = vpop.eup %3582  ;;  %v2058_v21 = vpop.f32.mrf.mxu0 }
 0x2b0   :  { %v2084_v22 = vpop.f32.mrf.mxu1  ;;  %v3585_v23 = vpop.eup %3584  ;;  %v2156_v24 = vmul.f32 %v3583_v20, %v2148_v9  ;;  %3586 = vpow2.f32 %v3313_v18  ;;  %vm2161_vm1 = vweird.f32 %v3583_v20  ;;  %v2059_v61 = vadd.f32 %v2058_v21, %v1359_v44 }
 0x2b1   :  { %v2171_v25 = vmul.f32 %v3585_v23, %v2149_v49  ;;  %3588 = vpow2.f32 %v3314_v19  ;;  %vm2176_vm2 = vweird.f32 %v3585_v23  ;;  %vm2162_vm4 = vmor %vm2160_vm3, %vm2161_vm1  ;;  %v2085_v62 = vadd.f32 %v2084_v22, %v1360_v45 }
 0x2b2   :  { %v2157_v26 = vsub.f32 1.0, %v2156_v24  ;;  %vm2177_vm7 = vmor %vm2175_vm5, %vm2176_vm2 }
 0x2b3   :  { %v2172_v28 = vsub.f32 1.0, %v2171_v25  ;;  %v2021_v29 = vpop.f32.mrf.mxu2  ;;  %v2047_v33 = vpop.f32.mrf.mxu3 }
 0x2b4   :  { %v2158_v35 = vmul.f32 %v3583_v20, %v2157_v26 }
 0x2b5   :  { %v2173_v39 = vmul.f32 %v3585_v23, %v2172_v28 }
 0x2b6   :  { %v3587_v41 = vpop.eup %3586  ;;  %v2159_v42 = vadd.f32 %v3583_v20, %v2158_v35  ;;  %v1361_v35 = vperm.slane %v5318_v32, 6 }
 0x2b7   :  { %v3589_v46 = vpop.eup %3588  ;;  %v2174_v48 = vadd.f32 %v3585_v23, %v2173_v39  ;;  %v2150_v50 = vadd.f32 1.0, %v3587_v41  ;;  %v2060_v52 = vpop.f32.mrf.mxu0 }
 0x2b8   :  { %v2086_v53 = vpop.f32.mrf.mxu1  ;;  %v2163_v54 = vsel %vm2162_vm4, %v3583_v20, %v2159_v42  ;;  %v2151_v56 = vadd.f32 1.0, %v3589_v46 }
 0x2b9   :  { %v2168_v57 = vsel %vm2165_vm6, %v2167_v47, %v2163_v54  ;;  %v2178_v59 = vsel %vm2177_vm7, %v3585_v23, %v2174_v48  ;;  %3590 = vrcp.f32 %v2150_v50  ;;  %v2196_v2 = vand.u32 2147483648, %v2150_v50 }
 0x2ba   :  { %2260 = vst [vmem:[%s5361_s10] sm:$0xff] %v2168_v57  ;;  %v2183_v60 = vsel %vm2180_vm8, %v2182_v55, %v2178_v59  ;;  %3592 = vrcp.f32 %v2151_v56  ;;  %v2194_v7 = vand.u32 2147483647, %v2150_v50  ;;  %v2211_v8 = vand.u32 2147483648, %v2151_v56 }
 0x2bb   :  { %2261 = vst [vmem:[%s5361_s10 + $0x8] sm:$0xff] %v2183_v60  ;;  %v2071_v63 = vpop.f32.mrf.mxu2  ;;  %v2097_v4 = vpop.f32.mrf.mxu3  ;;  %v2209_v11 = vand.u32 2147483647, %v2151_v56  ;;  %vm2190_vm11 = vweird.f32 %v2150_v50  ;;  %v2197_v14 = vor.u32 1.1754944e-38, %v2196_v2  ;;  %vm2205_vm13 = vweird.f32 %v2151_v56 }
 0x2bc   :  { %v2072_v0 = vadd.f32 %v2071_v63, %v2059_v61  ;;  %v2098_v1 = vadd.f32 %v2097_v4, %v2085_v62  ;;  %vm2195_vm14 = vcmp.eq.f32.partialorder %v2194_v7, 8.507059e+37  ;;  %v2212_v18 = vor.u32 1.1754944e-38, %v2211_v8 }
 0x2bd   :  { %vm2210_vm1 = vcmp.eq.f32.partialorder %v2209_v11, 8.507059e+37 }
 0x2be   :  { %v3315_v34 = vmul.f32 -1.442695, %v2072_v0  ;;  %v3316_v3 = vmul.f32 -1.442695, %v2098_v1 }
 0x2bf   :  { %v3591_v51 = vpop.eup %3590 }
 0x2c0   :  { %v3593_v31 = vpop.eup %3592  ;;  %v2186_v30 = vmul.f32 %v3591_v51, %v2150_v50  ;;  %3594 = vpow2.f32 %v3315_v34  ;;  %vm2191_vm9 = vweird.f32 %v3591_v51 }
 0x2c1   :  { %v2201_v43 = vmul.f32 %v3593_v31, %v2151_v56  ;;  %3596 = vpow2.f32 %v3316_v3  ;;  %vm2206_vm10 = vweird.f32 %v3593_v31  ;;  %vm2192_vm12 = vmor %vm2190_vm11, %vm2191_vm9 }
 0x2c2   :  { %v2187_v37 = vsub.f32 1.0, %v2186_v30  ;;  %vm2207_vm15 = vmor %vm2205_vm13, %vm2206_vm10 }
 0x2c3   :  { %v2202_v58 = vsub.f32 1.0, %v2201_v43  ;;  %v2073_v5 = vpop.f32.mrf.mxu2  ;;  %v2099_v9 = vpop.f32.mrf.mxu3 }
 0x2c4   :  { %v2188_v6 = vmul.f32 %v3591_v51, %v2187_v37 }
 0x2c5   :  { %v2203_v10 = vmul.f32 %v3593_v31, %v2202_v58 }
 0x2c6   :  { %v3595_v49 = vpop.eup %3594  ;;  %v2189_v12 = vadd.f32 %v3591_v51, %v2188_v6 }
 0x2c7   :  { %v3597_v13 = vpop.eup %3596  ;;  %v2204_v15 = vadd.f32 %v3593_v31, %v2203_v10  ;;  %v2152_v16 = vadd.f32 1.0, %v3595_v49 }
 0x2c8   :  { %v2193_v17 = vsel %vm2192_vm12, %v3591_v51, %v2189_v12  ;;  %v2153_v19 = vadd.f32 1.0, %v3597_v13 }
 0x2c9   :  { %v2198_v20 = vsel %vm2195_vm14, %v2197_v14, %v2193_v17  ;;  %v2208_v21 = vsel %vm2207_vm15, %v3593_v31, %v2204_v15  ;;  %3598 = vrcp.f32 %v2152_v16  ;;  %v2226_v29 = vand.u32 2147483648, %v2152_v16 }
 0x2ca   :  { %2262 = vst [vmem:[%s5361_s10 + $0x10] sm:$0xff] %v2198_v20  ;;  %v2213_v22 = vsel %vm2210_vm1, %v2212_v18, %v2208_v21  ;;  %3600 = vrcp.f32 %v2153_v19  ;;  %v2224_v38 = vand.u32 2147483647, %v2152_v16  ;;  %v2241_v39 = vand.u32 2147483648, %v2153_v19 }
 0x2cb   :  { %2263 = vst [vmem:[%s5361_s10 + $0x18] sm:$0xff] %v2213_v22  ;;  %v2239_v42 = vand.u32 2147483647, %v2153_v19  ;;  %vm2220_vm4 = vweird.f32 %v2152_v16  ;;  %v2227_v45 = vor.u32 1.1754944e-38, %v2226_v29  ;;  %vm2235_vm6 = vweird.f32 %v2153_v19 }
 0x2cc   :  { %vm2225_vm7 = vcmp.eq.f32.partialorder %v2224_v38, 8.507059e+37  ;;  %v2242_v50 = vor.u32 1.1754944e-38, %v2241_v39 }
 0x2cd   :  { %vm2240_vm9 = vcmp.eq.f32.partialorder %v2239_v42, 8.507059e+37 }
 0x2cf   :  { %v2110_v23 = vpop.f32.mrf.mxu0  ;;  %v3599_v24 = vpop.eup %3598 }
 0x2d0   :  { %v3601_v25 = vpop.eup %3600  ;;  %v2216_v26 = vmul.f32 %v3599_v24, %v2152_v16  ;;  %vm2221_vm2 = vweird.f32 %v3599_v24  ;;  %v2111_v47 = vadd.f32 %v2110_v23, %v1361_v35 }
 0x2d1   :  { %v2231_v27 = vmul.f32 %v3601_v25, %v2153_v19  ;;  %vm2236_vm3 = vweird.f32 %v3601_v25  ;;  %vm2222_vm5 = vmor %vm2220_vm4, %vm2221_vm2 }
 0x2d2   :  { %v2217_v28 = vsub.f32 1.0, %v2216_v26  ;;  %vm2237_vm8 = vmor %vm2235_vm6, %vm2236_vm3 }
 0x2d3   :  { %v2232_v33 = vsub.f32 1.0, %v2231_v27 }
 0x2d4   :  { %v2218_v36 = vmul.f32 %v3599_v24, %v2217_v28 }
 0x2d5   :  { %v2233_v41 = vmul.f32 %v3601_v25, %v2232_v33 }
 0x2d6   :  { %v2219_v44 = vadd.f32 %v3599_v24, %v2218_v36 }
 0x2d7   :  { %v2112_v40 = vpop.f32.mrf.mxu0  ;;  %v2234_v46 = vadd.f32 %v3601_v25, %v2233_v41 }
 0x2d8   :  { %v2223_v48 = vsel %vm2222_vm5, %v3599_v24, %v2219_v44 }
 0x2d9   :  { %v2228_v52 = vsel %vm2225_vm7, %v2227_v45, %v2223_v48  ;;  %v2238_v53 = vsel %vm2237_vm8, %v3601_v25, %v2234_v46 }
 0x2da   :  { %2264 = vst [vmem:[%s5361_s10 + $0x20] sm:$0xff] %v2228_v52  ;;  %v2243_v55 = vsel %vm2240_vm9, %v2242_v50, %v2238_v53 }
 0x2db   :  { %v2123_v32 = vpop.f32.mrf.mxu2  ;;  %2265 = vst [vmem:[%s5361_s10 + $0x28] sm:$0xff] %v2243_v55 }
 0x2dc   :  { %v2124_v54 = vadd.f32 %v2123_v32, %v2111_v47 }
 0x2de   :  { %v3317_v56 = vmul.f32 -1.442695, %v2124_v54 }
 0x2e0   :  { %3602 = vpow2.f32 %v3317_v56 }
 0x2e3   :  { %v2125_v57 = vpop.f32.mrf.mxu2 }
 0x2e6   :  { %v3603_v59 = vpop.eup %3602 }
 0x2e7   :  { %v2154_v60 = vadd.f32 1.0, %v3603_v59 }
 0x2e9   :  { %3604 = vrcp.f32 %v2154_v60  ;;  %v2256_v0 = vand.u32 2147483648, %v2154_v60  ;;  %v2254_v1 = vand.u32 2147483647, %v2154_v60  ;;  %vm2250_vm11 = vweird.f32 %v2154_v60 }
 0x2eb   :  { %v2257_v51 = vor.u32 1.1754944e-38, %v2256_v0  ;;  %vm2255_vm13 = vcmp.eq.f32.partialorder %v2254_v1, 8.507059e+37 }
 0x2ef   :  { %v3605_v61 = vpop.eup %3604 }
 0x2f0   :  { %v2246_v62 = vmul.f32 %v3605_v61, %v2154_v60  ;;  %vm2251_vm10 = vweird.f32 %v3605_v61 }
 0x2f1   :  { %vm2252_vm12 = vmor %vm2250_vm11, %vm2251_vm10 }
 0x2f2   :  { %v2247_v63 = vsub.f32 1.0, %v2246_v62 }
 0x2f4   :  { %v2248_v4 = vmul.f32 %v3605_v61, %v2247_v63 }
 0x2f6   :  { %v2249_v34 = vadd.f32 %v3605_v61, %v2248_v4 }
 0x2f8   :  { %v2253_v3 = vsel %vm2252_vm12, %v3605_v61, %v2249_v34 }
 0x2f9   :  { %v2258_v31 = vsel %vm2255_vm13, %v2257_v51, %v2253_v3 }
 0x2fa   :  { %2266 = vst.msk [vmem:[%s5361_s10 + $0x30] sm:$0xff] %vm647_vm0, %v2258_v31 }

</bundles_post_ra>
